<compile_context>
chip_gen: v7x
topology: tpu7x:2x2x1
jax: 0.10.0
libtpu: 0.0.40
codegen_flags: <defaults>
</compile_context>

<pallas_src>
import math
from functools import partial

import jax
import jax.numpy as jnp
from jax.experimental import pallas as pl
from jax.experimental.pallas import tpu as pltpu


def _gat_kernel(x_tile_ref, x_full_ref, adj_ref, wext_ref, b_ref, out_ref, *,
                num_heads, out_features, negative_slope):
    """One row-tile of the GAT forward.

    x_tile_ref : (TM, Fin)  f32   rows of this tile (for coeff_i)
    x_full_ref : (N,  Fin)  f32   all rows (for h columns / coeff_j / aggregation)
    adj_ref    : (TM, N)    int8  adjacency row tile (only >0 pattern matters)
    wext_ref   : (Fin, H*F + 2H) f32  [W | W @ A]  (A folds a_i / a_j per head)
    b_ref      : (1, H*F)   f32
    out_ref    : (TM, H*F)  f32
    """
    H, F = num_heads, out_features
    HF = H * F
    neg_slope = jnp.float32(negative_slope)

    wext = wext_ref[...]                                       # (Fin, HF+2H)
    # Full projection: h for all nodes + coeff_j for all nodes (MXU).
    hc_full = jnp.dot(x_full_ref[...], wext,
                      preferred_element_type=jnp.float32)      # (N, HF+2H)
    # Tile projection: coeff_i for this row tile only (tiny MXU matmul).
    hc_tile = jnp.dot(x_tile_ref[...], wext,
                      preferred_element_type=jnp.float32)      # (TM, HF+2H)

    # Adjacency mask: int8 -> bool once, shared by all heads.
    mask = adj_ref[...].astype(jnp.float32) > 0.0              # (TM, N)

    outs = []
    # TODO(synk): static head loop keeps all heads' (TM, N) temporaries
    # potentially live; fine at H=2, move heads to a grid axis for large H.
    for head in range(H):
        ci = hc_tile[:, HF + head:HF + head + 1]               # (TM, 1)
        cj = hc_full[:, HF + H + head:HF + H + head + 1]       # (N, 1)
        e = ci + jnp.transpose(cj)                             # (TM, N)
        # LeakyReLU, then adjacency masking (exact select -> matches PyTorch
        # behaviour incl. isolated-node rows degrading to a uniform softmax).
        e = jnp.where(e > 0, e, neg_slope * e)
        e = jnp.where(mask, e, jnp.float32(-9e15))
        # Row softmax over the neighbor axis; normalization folded into a
        # post-scale so no (TM, N) divide and no extra N^2 temporary.
        e_max = jnp.max(e, axis=1, keepdims=True)              # (TM, 1)
        p = jnp.exp(e - e_max)                                 # (TM, N)
        denom = jnp.sum(p, axis=1, keepdims=True)              # (TM, 1)
        # TODO(synk): F.dropout on the attention matrix is skipped (eval mode).
        h_head = hc_full[:, head * F:(head + 1) * F].astype(jnp.bfloat16)
        num = jnp.dot(p.astype(jnp.bfloat16), h_head,
                      preferred_element_type=jnp.float32)      # (TM, F)
        outs.append(num * pl.reciprocal(denom, approx=True))

    # Single lane-dense store: all heads concatenated + bias added once.
    out = jnp.concatenate(outs, axis=-1) + b_ref[...]          # (TM, HF)
    out_ref[...] = out.astype(out_ref.dtype)


def _pick_block_rows(n):
    for tm in (512, 256, 128):
        if n % tm == 0:
            return tm
    return n


def graph_attention_forward(x, adj, W, a_i, a_j, bias, *, num_heads,
                            out_features, negative_slope,
                            all_self_loop=False, block_rows=None):
    """Parameter prep + row-tiled pallas_call."""
    N, in_features = x.shape
    H, F = num_heads, out_features
    HF = H * F

    x = x.astype(jnp.float32)
    W = W.astype(jnp.float32)
    adj = adj.astype(jnp.float32)
    if all_self_loop:
        eye = jnp.eye(N, dtype=adj.dtype)
        adj = eye + adj * (jnp.ones((N, N), adj.dtype) - eye)
    # Only the ">0" pattern of adj is used downstream; ship it as int8 to cut
    # the dominant N^2 HBM traffic 4x.
    adj_mask = (adj > 0).astype(jnp.int8)

    a_i2 = a_i.reshape(H, F).astype(jnp.float32)
    a_j2 = a_j.reshape(H, F).astype(jnp.float32)
    # Fold the per-head attention-vector dot products into the projection:
    # column HF+h       of W_ext gives coeff_i of head h,
    # column HF+H+h     of W_ext gives coeff_j of head h.
    A = jnp.zeros((HF, 2 * H), jnp.float32)
    for h in range(H):
        A = A.at[h * F:(h + 1) * F, h].set(a_i2[h])
        A = A.at[h * F:(h + 1) * F, H + h].set(a_j2[h])
    w_ext = jnp.concatenate([W, W @ A], axis=1)                # (Fin, HF + 2H)

    if bias is None:
        b2 = jnp.zeros((1, HF), jnp.float32)
    else:
        b2 = bias.reshape(1, HF).astype(jnp.float32)

    TM = block_rows if block_rows is not None else _pick_block_rows(N)
    assert N % TM == 0, f"block_rows={TM} must divide N={N}"
    grid = (N // TM,)

    kernel = partial(_gat_kernel, num_heads=H, out_features=F,
                     negative_slope=negative_slope)

    return pl.pallas_call(
        kernel,
        out_shape=jax.ShapeDtypeStruct((N, HF), jnp.float32),
        grid=grid,
        in_specs=[
            pl.BlockSpec((TM, in_features), lambda i: (i, 0)),        # x row tile
            pl.BlockSpec((N, in_features), lambda i: (0, 0)),         # x full
            pl.BlockSpec((TM, N), lambda i: (i, 0)),                  # adj tile (i8)
            pl.BlockSpec((in_features, HF + 2 * H), lambda i: (0, 0)),  # W_ext
            pl.BlockSpec((1, HF), lambda i: (0, 0)),                  # bias
        ],
        out_specs=pl.BlockSpec((TM, HF), lambda i: (i, 0)),
        compiler_params=pltpu.CompilerParams(
            dimension_semantics=("parallel",)),
    )(x, x, adj_mask, w_ext, b2)


def _reference(x, adj, W, a_i, a_j, bias, num_heads, out_features,
               negative_slope):
    """Pure-JAX reference mirroring the PyTorch forward (eval mode)."""
    h = (x @ W).reshape(-1, num_heads, out_features)
    es = []
    for head in range(num_heads):
        ci = h[:, head, :] @ a_i[head]          # (N, 1)
        cj = h[:, head, :] @ a_j[head]          # (N, 1)
        es.append((ci + cj.T)[..., None])       # (N, N, 1)
    e = jnp.concatenate(es, axis=-1)
    e = jnp.where(e > 0, e, negative_slope * e)
    att = jnp.where(adj[:, :, None] > 0, e, jnp.float32(-9e15))
    att = jax.nn.softmax(att, axis=1)
    outs = [att[:, :, head] @ h[:, head, :] for head in range(num_heads)]
    return jnp.concatenate(outs, axis=-1) + bias


if __name__ == "__main__":
    # Small, deterministic problem; N=256 with block_rows=128 exercises a
    # 2-step pipelined grid.
    N = 256
    in_features = 32
    out_features = 32
    num_heads = 2
    negative_slope = 0.2

    key = jax.random.PRNGKey(0)
    kx, kadj, kw, kai, kaj = jax.random.split(key, 5)

    x = jax.random.normal(kx, (N, in_features), dtype=jnp.float32)
    adj = (jax.random.uniform(kadj, (N, N)) < 0.3).astype(jnp.float32)

    # Deterministic xavier-normal-style init (gain = sqrt(2), relu gain).
    gain = math.sqrt(2.0)
    std_w = gain * math.sqrt(2.0 / (in_features + num_heads * out_features))
    W = std_w * jax.random.normal(kw, (in_features, num_heads * out_features),
                                  dtype=jnp.float32)
    std_a = gain * math.sqrt(2.0 / (out_features + num_heads))
    a_i = std_a * jax.random.normal(kai, (num_heads, out_features, 1),
                                    dtype=jnp.float32)
    a_j = std_a * jax.random.normal(kaj, (num_heads, out_features, 1),
                                    dtype=jnp.float32)
    bias = jnp.zeros((num_heads * out_features,), dtype=jnp.float32)

    out = graph_attention_forward(
        x, adj, W, a_i, a_j, bias,
        num_heads=num_heads, out_features=out_features,
        negative_slope=negative_slope, all_self_loop=False, block_rows=128)
    out = jax.block_until_ready(out)

    ref = _reference(x, adj, W, a_i, a_j, bias, num_heads, out_features,
                     negative_slope)
    ref = jax.block_until_ready(ref)

    assert out.shape == (N, num_heads * out_features)
    # bf16 MXU aggregation + approx reciprocal -> relaxed tolerance.
    assert jnp.allclose(out, ref, rtol=2e-2, atol=2e-2), (
        f"max abs err {jnp.max(jnp.abs(out - ref))}")
    print("KERNEL_OK")
</pallas_src>

<mosaic_0001>
module attributes {stable_mosaic.version = 11 : i64} {
  func.func @_gat_kernel(%arg0: i32, %arg1: memref<128x32xf32, #tpu.memory_space<vmem>>, %arg2: memref<256x32xf32, #tpu.memory_space<vmem>>, %arg3: memref<128x256xi8, #tpu.memory_space<vmem>>, %arg4: memref<32x68xf32, #tpu.memory_space<vmem>>, %arg5: memref<1x64xf32, #tpu.memory_space<vmem>>, %arg6: memref<128x64xf32, #tpu.memory_space<vmem>>) attributes {dimension_semantics = [#tpu.dimension_semantics<parallel>], iteration_bounds = array<i64: 2>, scalar_prefetch = 0 : i64, scratch_operands = 0 : i64, tpu.core_type = #tpu.core_type<tc>, window_params = [{transform_indices = @transform_0, window_bounds = array<i64: 128, 32>}, {pipeline_mode = #tpu.pipeline_mode<synchronous>, transform_indices = @transform_1, window_bounds = array<i64: 256, 32>}, {transform_indices = @transform_2, window_bounds = array<i64: 128, 256>}, {pipeline_mode = #tpu.pipeline_mode<synchronous>, transform_indices = @transform_3, window_bounds = array<i64: 32, 68>}, {pipeline_mode = #tpu.pipeline_mode<synchronous>, transform_indices = @transform_4, window_bounds = array<i64: 1, 64>}, {transform_indices = @transform_5, window_bounds = array<i64: 128, 64>}]} {
    %c0 = arith.constant 0 : index
    %c0_0 = arith.constant 0 : index
    %0 = vector.load %arg4[%c0, %c0_0] : memref<32x68xf32, #tpu.memory_space<vmem>>, vector<32x68xf32>
    %c0_1 = arith.constant 0 : index
    %c0_2 = arith.constant 0 : index
    %1 = vector.load %arg2[%c0_1, %c0_2] : memref<256x32xf32, #tpu.memory_space<vmem>>, vector<256x32xf32>
    %cst = arith.constant dense<0.000000e+00> : vector<256x68xf32>
    %2 = tpu.matmul %1, %0, %cst {dimension_numbers = #tpu.dot_dimension_numbers<[1], [0], [0], [1], [0, 0, 1, 1], [], []>} : vector<256x32xf32>, vector<32x68xf32>, vector<256x68xf32> -> vector<256x68xf32>
    %c0_3 = arith.constant 0 : index
    %c0_4 = arith.constant 0 : index
    %3 = vector.load %arg1[%c0_3, %c0_4] : memref<128x32xf32, #tpu.memory_space<vmem>>, vector<128x32xf32>
    %cst_5 = arith.constant dense<0.000000e+00> : vector<128x68xf32>
    %4 = tpu.matmul %3, %0, %cst_5 {dimension_numbers = #tpu.dot_dimension_numbers<[1], [0], [0], [1], [0, 0, 1, 1], [], []>} : vector<128x32xf32>, vector<32x68xf32>, vector<128x68xf32> -> vector<128x68xf32>
    %c0_6 = arith.constant 0 : index
    %c0_7 = arith.constant 0 : index
    %5 = vector.load %arg3[%c0_6, %c0_7] : memref<128x256xi8, #tpu.memory_space<vmem>>, vector<128x256xi8>
    %6 = arith.sitofp %5 : vector<128x256xi8> to vector<128x256xf32>
    %cst_8 = arith.constant 0.000000e+00 : f32
    %7 = vector.broadcast %cst_8 : f32 to vector<128x256xf32>
    %8 = arith.cmpf ogt, %6, %7 : vector<128x256xf32>
    %9 = vector.extract_strided_slice %4 {offsets = [0, 64], sizes = [128, 1], strides = [1, 1]} : vector<128x68xf32> to vector<128x1xf32>
    %10 = vector.extract_strided_slice %2 {offsets = [0, 66], sizes = [256, 1], strides = [1, 1]} : vector<256x68xf32> to vector<256x1xf32>
    %11 = tpu.transpose %10, [1, 0] : vector<256x1xf32> -> vector<1x256xf32>
    %12 = vector.broadcast %9 : vector<128x1xf32> to vector<128x256xf32>
    %13 = vector.broadcast %11 : vector<1x256xf32> to vector<128x256xf32>
    %14 = arith.addf %12, %13 : vector<128x256xf32>
    %cst_9 = arith.constant 0.000000e+00 : f32
    %15 = vector.broadcast %cst_9 : f32 to vector<128x256xf32>
    %16 = arith.cmpf ogt, %14, %15 : vector<128x256xf32>
    %cst_10 = arith.constant 2.000000e-01 : f32
    %17 = vector.broadcast %cst_10 : f32 to vector<128x256xf32>
    %18 = arith.mulf %17, %14 : vector<128x256xf32>
    %19 = arith.select %16, %14, %18 : vector<128x256xi1>, vector<128x256xf32>
    %cst_11 = arith.constant -9.000000e+15 : f32
    %20 = vector.broadcast %cst_11 : f32 to vector<128x256xf32>
    %21 = arith.select %8, %19, %20 : vector<128x256xi1>, vector<128x256xf32>
    %cst_12 = arith.constant dense<0xFF800000> : vector<128xf32>
    %22 = vector.multi_reduction <maximumf>, %21, %cst_12 [1] : vector<128x256xf32> to vector<128xf32>
    %23 = vector.shape_cast %22 : vector<128xf32> to vector<128x1xf32>
    %24 = vector.broadcast %23 : vector<128x1xf32> to vector<128x256xf32>
    %25 = arith.subf %21, %24 : vector<128x256xf32>
    %26 = math.exp %25 : vector<128x256xf32>
    %cst_13 = arith.constant dense<0.000000e+00> : vector<128xf32>
    %27 = vector.multi_reduction <add>, %26, %cst_13 [1] : vector<128x256xf32> to vector<128xf32>
    %28 = vector.shape_cast %27 : vector<128xf32> to vector<128x1xf32>
    %29 = vector.extract_strided_slice %2 {offsets = [0, 0], sizes = [256, 32], strides = [1, 1]} : vector<256x68xf32> to vector<256x32xf32>
    %30 = arith.truncf %29 : vector<256x32xf32> to vector<256x32xbf16>
    %31 = arith.truncf %26 : vector<128x256xf32> to vector<128x256xbf16>
    %cst_14 = arith.constant dense<0.000000e+00> : vector<128x32xf32>
    %32 = tpu.matmul %31, %30, %cst_14 {dimension_numbers = #tpu.dot_dimension_numbers<[1], [0], [0], [1], [0, 0, 1, 1], [], []>} : vector<128x256xbf16>, vector<256x32xbf16>, vector<128x32xf32> -> vector<128x32xf32>
    %33 = tpu.reciprocal %28 {approx = true} : vector<128x1xf32> -> vector<128x1xf32>
    %34 = vector.broadcast %33 : vector<128x1xf32> to vector<128x32xf32>
    %35 = arith.mulf %32, %34 : vector<128x32xf32>
    %36 = vector.extract_strided_slice %4 {offsets = [0, 65], sizes = [128, 1], strides = [1, 1]} : vector<128x68xf32> to vector<128x1xf32>
    %37 = vector.extract_strided_slice %2 {offsets = [0, 67], sizes = [256, 1], strides = [1, 1]} : vector<256x68xf32> to vector<256x1xf32>
    %38 = tpu.transpose %37, [1, 0] : vector<256x1xf32> -> vector<1x256xf32>
    %39 = vector.broadcast %36 : vector<128x1xf32> to vector<128x256xf32>
    %40 = vector.broadcast %38 : vector<1x256xf32> to vector<128x256xf32>
    %41 = arith.addf %39, %40 : vector<128x256xf32>
    %cst_15 = arith.constant 0.000000e+00 : f32
    %42 = vector.broadcast %cst_15 : f32 to vector<128x256xf32>
    %43 = arith.cmpf ogt, %41, %42 : vector<128x256xf32>
    %cst_16 = arith.constant 2.000000e-01 : f32
    %44 = vector.broadcast %cst_16 : f32 to vector<128x256xf32>
    %45 = arith.mulf %44, %41 : vector<128x256xf32>
    %46 = arith.select %43, %41, %45 : vector<128x256xi1>, vector<128x256xf32>
    %cst_17 = arith.constant -9.000000e+15 : f32
    %47 = vector.broadcast %cst_17 : f32 to vector<128x256xf32>
    %48 = arith.select %8, %46, %47 : vector<128x256xi1>, vector<128x256xf32>
    %cst_18 = arith.constant dense<0xFF800000> : vector<128xf32>
    %49 = vector.multi_reduction <maximumf>, %48, %cst_18 [1] : vector<128x256xf32> to vector<128xf32>
    %50 = vector.shape_cast %49 : vector<128xf32> to vector<128x1xf32>
    %51 = vector.broadcast %50 : vector<128x1xf32> to vector<128x256xf32>
    %52 = arith.subf %48, %51 : vector<128x256xf32>
    %53 = math.exp %52 : vector<128x256xf32>
    %cst_19 = arith.constant dense<0.000000e+00> : vector<128xf32>
    %54 = vector.multi_reduction <add>, %53, %cst_19 [1] : vector<128x256xf32> to vector<128xf32>
    %55 = vector.shape_cast %54 : vector<128xf32> to vector<128x1xf32>
    %56 = vector.extract_strided_slice %2 {offsets = [0, 32], sizes = [256, 32], strides = [1, 1]} : vector<256x68xf32> to vector<256x32xf32>
    %57 = arith.truncf %56 : vector<256x32xf32> to vector<256x32xbf16>
    %58 = arith.truncf %53 : vector<128x256xf32> to vector<128x256xbf16>
    %cst_20 = arith.constant dense<0.000000e+00> : vector<128x32xf32>
    %59 = tpu.matmul %58, %57, %cst_20 {dimension_numbers = #tpu.dot_dimension_numbers<[1], [0], [0], [1], [0, 0, 1, 1], [], []>} : vector<128x256xbf16>, vector<256x32xbf16>, vector<128x32xf32> -> vector<128x32xf32>
    %60 = tpu.reciprocal %55 {approx = true} : vector<128x1xf32> -> vector<128x1xf32>
    %61 = vector.broadcast %60 : vector<128x1xf32> to vector<128x32xf32>
    %62 = arith.mulf %59, %61 : vector<128x32xf32>
    %63 = tpu.concatenate %35, %62 in 1 : vector<128x32xf32>, vector<128x32xf32> -> vector<128x64xf32>
    %c0_21 = arith.constant 0 : index
    %c0_22 = arith.constant 0 : index
    %64 = vector.load %arg5[%c0_21, %c0_22] : memref<1x64xf32, #tpu.memory_space<vmem>>, vector<1x64xf32>
    %65 = vector.broadcast %64 : vector<1x64xf32> to vector<128x64xf32>
    %66 = arith.addf %63, %65 : vector<128x64xf32>
    %c0_23 = arith.constant 0 : index
    %c0_24 = arith.constant 0 : index
    %67 = vector.load %arg6[%c0_23, %c0_24] : memref<128x64xf32, #tpu.memory_space<vmem>>, vector<128x64xf32>
    tpu.vector_store %arg6[%c0_23, %c0_24], %66 {strides = array<i32>} : memref<128x64xf32, #tpu.memory_space<vmem>>, vector<128x64xf32>,
    return
  }
  func.func @transform_0(%arg0: i32) -> (i32, i32) {
    %c0_i32 = arith.constant 0 : i32
    %c0_i32_0 = arith.constant 0 : i32
    return %arg0, %c0_i32 : i32, i32
  }
  func.func @transform_1(%arg0: i32) -> (i32, i32) {
    %c0_i32 = arith.constant 0 : i32
    %c0_i32_0 = arith.constant 0 : i32
    %c0_i32_1 = arith.constant 0 : i32
    return %c0_i32, %c0_i32_0 : i32, i32
  }
  func.func @transform_2(%arg0: i32) -> (i32, i32) {
    %c0_i32 = arith.constant 0 : i32
    %c0_i32_0 = arith.constant 0 : i32
    return %arg0, %c0_i32 : i32, i32
  }
  func.func @transform_3(%arg0: i32) -> (i32, i32) {
    %c0_i32 = arith.constant 0 : i32
    %c0_i32_0 = arith.constant 0 : i32
    %c0_i32_1 = arith.constant 0 : i32
    return %c0_i32, %c0_i32_0 : i32, i32
  }
  func.func @transform_4(%arg0: i32) -> (i32, i32) {
    %c0_i32 = arith.constant 0 : i32
    %c0_i32_0 = arith.constant 0 : i32
    %c0_i32_1 = arith.constant 0 : i32
    return %c0_i32, %c0_i32_0 : i32, i32
  }
  func.func @transform_5(%arg0: i32) -> (i32, i32) {
    %c0_i32 = arith.constant 0 : i32
    %c0_i32_0 = arith.constant 0 : i32
    return %arg0, %c0_i32 : i32, i32
  }
}

</mosaic_0001>

<bundles_post_ra>
// kernel: tpu_custom_call.1
= control target key start
LH: loop header
LB: loop body
LE: loop exit
PB: predicated region body
PF: predicated region fallthrough
CT: control target
= control target key end

     0   :  { %s3310_s18 = smov 0   ;;  %s4856_s0 = inlined_call_operand.vmem [shape: f32[256,32], index: 0, kind: input, shape index: {}]   ;;  %s4857_s1 = inlined_call_operand.vmem [shape: f32[256,32], index: 1, kind: input, shape index: {}]   ;;  %s4858_s2 = inlined_call_operand.vmem [shape: s8[256,256], index: 2, kind: input, shape index: {}]   ;;  %s4859_s3 = inlined_call_operand.vmem [shape: f32[32,68], index: 3, kind: input, shape index: {}]   ;;  %s4860_s4 = inlined_call_operand.vmem [shape: f32[1,64], index: 4, kind: input, shape index: {}]   ;;  %s4861_s5 = inlined_call_operand.vmem [shape: f32[256,64], index: 5, kind: output, shape index: {}]  }
   0x1 LB: > { %s2699_s19 = sadd.s32 4294967295, %s3272_s18   ;;  %p2703_p0 = scmp.ge.s32.totalorder %s3272_s18, 1  ;;  %s3272_s18 = sphi %s3310_s18, %s15_s18  }
   0x2   : > { %p200_p1 = scmp.lt.s32.totalorder %s3272_s18, 3 }
   0x4   : > { %p201_p2 = pnand %p2703_p0, %p200_p1 }
   0x6   : > { %204 = sbr.rel (%p201_p2) target bundleno = 1410 (0x582), region = 40 }
   0xd   : > { %v254_v0 = vld [vmem:[%s4859_s3] sm:$0xff]  ;;  %v255_v1 = vld [vmem:[%s4859_s3 + $0x8] sm:$0xff]  ;;  %v256_v2 = vld [vmem:[%s4859_s3 + $0x10] sm:$0xff]  ;;  %vm4875_vm0 = vcmask 261120   ;;  %s2704_s7 = sshll.u32 %s2699_s19, 4  ;;  %v4862_v54 = vmov 65  }
   0xe   : > { %v3035_v3 = vpack.c.bf16 %v255_v1, %v254_v0  ;;  %v257_v4 = vld [vmem:[%s4859_s3 + $0x18] sm:$0xff]  ;;  %v258_v5 = vld [vmem:[%s4857_s1] sm:$0xff]  ;;  %p235_p3 = scmp.lt.s32.totalorder %s2704_s7, 31  ;;  %v259_v8 = vld [vmem:[%s4857_s1 + $0x8] sm:$0xff]  ;;  %3069 = vset.pattern.permute.xlu1 %v4862_v54  ;;  %3070 = vset.pattern.permute.xlu0 %v4862_v54  ;;  %s3275_s9 = smov 62  }
   0xf   : > { %v282_v6 = vld [vmem:[%s4857_s1 + $0xc0] sm:$0xff]  ;;  %v3039_v7 = vpack.c.bf16 %v257_v4, %v256_v2  ;;  %2955 = vmatprep.mubr.msk.f32.mxu0 %vm4875_vm0, %v258_v5  ;;  %v283_v9 = vld [vmem:[%s4857_s1 + $0xc8] sm:$0xff]  ;;  %v260_v10 = vld [vmem:[%s4857_s1 + $0x10] sm:$0xff]  ;;  %s3277_s10 = smov 96   ;;  %s2706_s11 = sshll.u32 %s2699_s19, 2 }
  0x10   : > { %2991 = vmatprep.mubr.msk.f32.mxu1 %vm4875_vm0, %v282_v6  ;;  %3036 = vmatprep.subr.bf16.mxu0 %v3035_v3  ;;  %v284_v11 = vld [vmem:[%s4857_s1 + $0xd0] sm:$0xff]  ;;  %s5044_s7 = smov (!%p235_p3, %s2704_s7), 31  ;;  %v261_v12 = vld [vmem:[%s4857_s1 + $0x18] sm:$0xff]  ;;  %v262_v14 = vld [vmem:[%s4857_s1 + $0x20] sm:$0xff]  ;;  %p241_p4 = scmp.lt.s32.totalorder %s2706_s11, 7 }
  0x11   : > { %3051 = vmatprep.subr.bf16.mxu1 %v3035_v3  ;;  %3038 = vmatpush3.bf16.msra.mxu0 %v3035_v3  ;;  %v285_v13 = vld [vmem:[%s4857_s1 + $0xd8] sm:$0xff]  ;;  %v286_v15 = vld [vmem:[%s4857_s1 + $0xe0] sm:$0xff]  ;;  %s2705_s26 = sshll.u32 %s5044_s7, 3  ;;  %v263_v16 = vld [vmem:[%s4857_s1 + $0x28] sm:$0xff]  ;;  %s3279_s19 = smov 32  }
  0x12   : > { %3053 = vmatpush3.bf16.msra.mxu1 %v3035_v3  ;;  %3040 = vmatprep.subr.bf16.mxu0 %v3039_v7  ;;  %v287_v17 = vld [vmem:[%s4857_s1 + $0xe8] sm:$0xff]  ;;  %v264_v18 = vld [vmem:[%s4857_s1 + $0x30] sm:$0xff]  ;;  %s3392_s13 = scalar_lea.vmem %s4856_s0, %s2705_s26  ;;  %v265_v20 = vld [vmem:[%s4857_s1 + $0x38] sm:$0xff]  ;;  %s5046_s11 = smov (!%p241_p4, %s2706_s11), 7 }
  0x13   : > { %3052 = vmatprep.subr.bf16.mxu1 %v3039_v7  ;;  %v288_v19 = vld [vmem:[%s4857_s1 + $0xf0] sm:$0xff]  ;;  %v289_v21 = vld [vmem:[%s4857_s1 + $0xf8] sm:$0xff]  ;;  %v266_v22 = vld [vmem:[%s4857_s1 + $0x40] sm:$0xff]  ;;  %s2762_s12 = sshll.u32 %s5046_s11, 4  ;;  %s4779_s23 = scalar_lea.vmem %s4861_s5, %s2705_s26 }
  0x14   : > { %v612_v23 = vld [vmem:[%s3392_s13] sm:$0xff]  ;;  %v267_v24 = vld [vmem:[%s4857_s1 + $0x48] sm:$0xff]  ;;  %v268_v26 = vld [vmem:[%s4857_s1 + $0x50] sm:$0xff]  ;;  %s3869_s16 = scalar_lea.vmem %s4858_s2, %s2762_s12 }
  0x15   : > { %3042 = vmatpush3.bf16.msra.mxu0 %v3039_v7  ;;  %v613_v25 = vld [vmem:[%s3392_s13 + $0x8] sm:$0xff]  ;;  %v614_v27 = vld [vmem:[%s3392_s13 + $0x10] sm:$0xff]  ;;  %v269_v28 = vld [vmem:[%s4857_s1 + $0x58] sm:$0xff] }
  0x16   : > { %3054 = vmatpush3.bf16.msra.mxu1 %v3039_v7  ;;  %v615_v29 = vld [vmem:[%s3392_s13 + $0x18] sm:$0xff]  ;;  %v270_v30 = vld [vmem:[%s4857_s1 + $0x60] sm:$0xff]  ;;  %v271_v32 = vld [vmem:[%s4857_s1 + $0x68] sm:$0xff] }
  0x17   : > { %3044 = vmatprep.subr.bf16.mxu1 %v3035_v3  ;;  %v616_v31 = vld [vmem:[%s3392_s13 + $0x20] sm:$0xff]  ;;  %v617_v33 = vld [vmem:[%s3392_s13 + $0x28] sm:$0xff]  ;;  %v272_v34 = vld [vmem:[%s4857_s1 + $0x70] sm:$0xff] }
  0x18   : > { %2956 = vmatmul.mubr.msk.f32.vlgmr.msra.gmra.mrb[0].mxu0 %vm4875_vm0, %v259_v8  ;;  %v618_v35 = vld [vmem:[%s3392_s13 + $0x30] sm:$0xff]  ;;  %v273_v36 = vld [vmem:[%s4857_s1 + $0x78] sm:$0xff]  ;;  %v274_v38 = vld [vmem:[%s4857_s1 + $0x80] sm:$0xff] }
  0x19   : > { %2992 = vmatmul.mubr.msk.f32.vlgmr.msra.gmra.mrb[0].mxu1 %vm4875_vm0, %v283_v9  ;;  %2958 = vmatprep.mubr.msk.f32.mxu0 %vm4875_vm0, %v260_v10  ;;  %v619_v37 = vld [vmem:[%s3392_s13 + $0x38] sm:$0xff]  ;;  %v620_v39 = vld [vmem:[%s3392_s13 + $0x40] sm:$0xff]  ;;  %v275_v40 = vld [vmem:[%s4857_s1 + $0x88] sm:$0xff] }
  0x1a   : > { %2994 = vmatprep.mubr.msk.f32.mxu1 %vm4875_vm0, %v284_v11  ;;  %3046 = vmatpush3.bf16.msra.mxu1 %v3035_v3  ;;  %v621_v41 = vld [vmem:[%s3392_s13 + $0x48] sm:$0xff]  ;;  %v276_v42 = vld [vmem:[%s4857_s1 + $0x90] sm:$0xff]  ;;  %v277_v44 = vld [vmem:[%s4857_s1 + $0x98] sm:$0xff] }
  0x1b   : > { %3048 = vmatprep.subr.bf16.mxu1 %v3039_v7  ;;  %v622_v43 = vld [vmem:[%s3392_s13 + $0x50] sm:$0xff]  ;;  %v623_v45 = vld [vmem:[%s3392_s13 + $0x58] sm:$0xff]  ;;  %v278_v46 = vld [vmem:[%s4857_s1 + $0xa0] sm:$0xff] }
  0x1c   : > { %2959 = vmatmul.mubr.msk.f32.gmra.mrb[2].mxu0 %vm4875_vm0, %v261_v12  ;;  %v624_v47 = vld [vmem:[%s3392_s13 + $0x60] sm:$0xff]  ;;  %v279_v48 = vld [vmem:[%s4857_s1 + $0xa8] sm:$0xff]  ;;  %v280_v50 = vld [vmem:[%s4857_s1 + $0xb0] sm:$0xff] }
  0x1d   : > { %2995 = vmatmul.mubr.msk.f32.gmra.mrb[2].mxu1 %vm4875_vm0, %v285_v13  ;;  %2961 = vmatprep.mubr.msk.f32.mxu0 %vm4875_vm0, %v262_v14  ;;  %v625_v49 = vld [vmem:[%s3392_s13 + $0x68] sm:$0xff]  ;;  %v626_v51 = vld [vmem:[%s3392_s13 + $0x70] sm:$0xff]  ;;  %v281_v52 = vld [vmem:[%s4857_s1 + $0xb8] sm:$0xff] }
  0x1e   : > { %2997 = vmatprep.mubr.msk.f32.mxu1 %vm4875_vm0, %v286_v15  ;;  %3050 = vmatpush3.bf16.msra.mxu1 %v3039_v7  ;;  %v627_v53 = vld [vmem:[%s3392_s13 + $0x78] sm:$0xff]  ;;  %s3276_s13 = smov 61  }
  0x20   : > { %2962 = vmatmul.mubr.msk.f32.gmra.mrb[4].mxu0 %vm4875_vm0, %v263_v16 }
  0x21   : > { %2998 = vmatmul.mubr.msk.f32.gmra.mrb[4].mxu1 %vm4875_vm0, %v287_v17  ;;  %2964 = vmatprep.mubr.msk.f32.mxu0 %vm4875_vm0, %v264_v18 }
  0x22   : > { %3000 = vmatprep.mubr.msk.f32.mxu1 %vm4875_vm0, %v288_v19 }
  0x24   : > { %2965 = vmatmul.mubr.msk.f32.gmra.mrb[6].mxu0 %vm4875_vm0, %v265_v20 }
  0x25   : > { %3001 = vmatmul.mubr.msk.f32.gmra.mrb[6].mxu1 %vm4875_vm0, %v289_v21  ;;  %2967 = vmatprep.mubr.msk.f32.mxu0 %vm4875_vm0, %v266_v22 }
  0x26   : > { %3011 = vmatprep.mubr.msk.f32.mxu1 %vm4875_vm0, %v612_v23 }
  0x28   : > { %2968 = vmatmul.mubr.msk.f32.gmra.mrb[8].mxu0 %vm4875_vm0, %v267_v24 }
  0x29   : > { %3012 = vmatmul.mubr.msk.f32.vlgmr.msra.gmra.mrb[8].mxu1 %vm4875_vm0, %v613_v25  ;;  %2970 = vmatprep.mubr.msk.f32.mxu0 %vm4875_vm0, %v268_v26 }
  0x2a   : > { %3014 = vmatprep.mubr.msk.f32.mxu1 %vm4875_vm0, %v614_v27 }
  0x2c   : > { %2971 = vmatmul.mubr.msk.f32.gmra.mrb[10].mxu0 %vm4875_vm0, %v269_v28 }
  0x2d   : > { %3015 = vmatmul.mubr.msk.f32.gmra.mrb[10].mxu1 %vm4875_vm0, %v615_v29  ;;  %2973 = vmatprep.mubr.msk.f32.mxu0 %vm4875_vm0, %v270_v30 }
  0x2e   : > { %3017 = vmatprep.mubr.msk.f32.mxu1 %vm4875_vm0, %v616_v31 }
  0x30   : > { %2974 = vmatmul.mubr.msk.f32.gmra.mrb[12].mxu0 %vm4875_vm0, %v271_v32 }
  0x31   : > { %3018 = vmatmul.mubr.msk.f32.gmra.mrb[12].mxu1 %vm4875_vm0, %v617_v33  ;;  %2976 = vmatprep.mubr.msk.f32.mxu0 %vm4875_vm0, %v272_v34 }
  0x32   : > { %3020 = vmatprep.mubr.msk.f32.mxu1 %vm4875_vm0, %v618_v35 }
  0x34   : > { %2977 = vmatmul.mubr.msk.f32.gmra.mrb[14].mxu0 %vm4875_vm0, %v273_v36 }
  0x35   : > { %3021 = vmatmul.mubr.msk.f32.gmra.mrb[14].mxu1 %vm4875_vm0, %v619_v37  ;;  %2979 = vmatprep.mubr.msk.f32.mxu0 %vm4875_vm0, %v274_v38 }
  0x36   : > { %3023 = vmatprep.mubr.msk.f32.mxu1 %vm4875_vm0, %v620_v39 }
  0x38   : > { %2980 = vmatmul.mubr.msk.f32.gmra.mrb[16].mxu0 %vm4875_vm0, %v275_v40 }
  0x39   : > { %3024 = vmatmul.mubr.msk.f32.gmra.mrb[16].mxu1 %vm4875_vm0, %v621_v41  ;;  %2982 = vmatprep.mubr.msk.f32.mxu0 %vm4875_vm0, %v276_v42 }
  0x3a   : > { %3026 = vmatprep.mubr.msk.f32.mxu1 %vm4875_vm0, %v622_v43 }
  0x3c   : > { %2983 = vmatmul.mubr.msk.f32.gmra.mrb[18].mxu0 %vm4875_vm0, %v277_v44 }
  0x3d   : > { %3027 = vmatmul.mubr.msk.f32.gmra.mrb[18].mxu1 %vm4875_vm0, %v623_v45  ;;  %2985 = vmatprep.mubr.msk.f32.mxu0 %vm4875_vm0, %v278_v46 }
  0x3e   : > { %3029 = vmatprep.mubr.msk.f32.mxu1 %vm4875_vm0, %v624_v47 }
  0x40   : > { %2986 = vmatmul.mubr.msk.f32.gmra.mrb[20].mxu0 %vm4875_vm0, %v279_v48 }
  0x41   : > { %3030 = vmatmul.mubr.msk.f32.gmra.mrb[20].mxu1 %vm4875_vm0, %v625_v49  ;;  %2988 = vmatprep.mubr.msk.f32.mxu0 %vm4875_vm0, %v280_v50 }
  0x42   : > { %3032 = vmatprep.mubr.msk.f32.mxu1 %vm4875_vm0, %v626_v51 }
  0x44   : > { %2989 = vmatmul.mubr.msk.f32.gmra.mrb[22].mxu0 %vm4875_vm0, %v281_v52 }
  0x45   : > { %3033 = vmatmul.mubr.msk.f32.gmra.mrb[22].mxu1 %vm4875_vm0, %v627_v53 }
  0xeb   : > { %v2957_v55 = vpop.f32.mrb[0].mxu0 }
  0xec   : > { %v2993_v56 = vpop.f32.mrb[0].mxu1  ;;  %959 = vrot.lane.b32.xlu0 %v2957_v55, %s3275_s9  ;;  %v453_v58 = vpop.f32.mrb[1].mxu0 }
  0xed   : > { %1007 = vrot.lane.b32.xlu1 %v2993_v56, %s3275_s9  ;;  %v573_v57 = vpop.f32.mrb[1].mxu1  ;;  %v3508_v60 = vpack.c.bf16 %v2957_v55, %v453_v58 }
  0xee   : > { %v3506_v59 = vpack.c.bf16 %v2993_v56, %v573_v57 }
  0xef   : > { %v2960_v61 = vpop.f32.mrb[2].mxu0 }
  0xf0   : > { %v2996_v62 = vpop.f32.mrb[2].mxu1  ;;  %1720 = vrot.lane.b32.xlu0 %v2957_v55, %s3276_s13  ;;  %v463_v63 = vpop.f32.mrb[3].mxu0 }
  0xf1   : > { %1768 = vrot.lane.b32.xlu1 %v2993_v56, %s3276_s13  ;;  %v583_v0 = vpop.f32.mrb[3].mxu1  ;;  %v3512_v1 = vpack.c.bf16 %v2960_v61, %v463_v63 }
  0xf2   : > { %v3514_v2 = vpack.c.bf16 %v2996_v62, %v583_v0 }
  0xf3   : > { %v2963_v3 = vpop.f32.mrb[4].mxu0 }
  0xf4   : > { %v2999_v4 = vpop.f32.mrb[4].mxu1  ;;  %957 = vrot.lane.b32.xlu0 %v453_v58, %s3275_s9  ;;  %v3518_v5 = vpop.f32.mrb[5].mxu0 }
  0xf5   : > { %1766 = vrot.lane.b32.xlu1 %v573_v57, %s3276_s13  ;;  %v3520_v6 = vpop.f32.mrb[5].mxu1  ;;  %v3523_v7 = vpack.c.bf16 %v2963_v3, %v3518_v5 }
  0xf6   : > { %v3526_v8 = vpack.c.bf16 %v2999_v4, %v3520_v6 }
  0xf7   : > { %v3528_v9 = vpop.f32.mrb[6].mxu0 }
  0xf8   : > { %v3530_v10 = vpop.f32.mrb[6].mxu1  ;;  %1005 = vrot.lane.b32.xlu0 %v573_v57, %s3275_s9  ;;  %v3534_v11 = vpop.f32.mrb[7].mxu0 }
  0xf9   : > { %963 = vrot.lane.b32.xlu1 %v2960_v61, %s3275_s9  ;;  %v3536_v12 = vpop.f32.mrb[7].mxu1  ;;  %v3540_v13 = vpack.c.bf16 %v3528_v9, %v3534_v11 }
  0xfa   : > { %v3544_v14 = vpack.c.bf16 %v3530_v10, %v3536_v12 }
  0xfb   : > { %v3546_v15 = vpop.f32.mrb[8].mxu0 }
  0xfc   : > { %v3548_v16 = vpop.f32.mrb[8].mxu1  ;;  %1718 = vrot.lane.b32.xlu0 %v453_v58, %s3276_s13  ;;  %v3552_v17 = vpop.f32.mrb[9].mxu0 }
  0xfd   : > { %4921 = vst [vmem:[#allocation2_spill] sm:$0xff] %v3548_v16  ;;  %1011 = vrot.lane.b32.xlu1 %v2996_v62, %s3275_s9  ;;  %v3554_v18 = vpop.f32.mrb[9].mxu1  ;;  %v3558_v19 = vpack.c.bf16 %v3546_v15, %v3552_v17 }
  0xff   : > { %v3560_v20 = vpop.f32.mrb[10].mxu0 }
 0x100   : > { %v3562_v21 = vpop.f32.mrb[10].mxu1  ;;  %1724 = vrot.lane.b32.xlu0 %v2960_v61, %s3276_s13  ;;  %v3566_v22 = vpop.f32.mrb[11].mxu0 }
 0x101   : > { %1772 = vrot.lane.b32.xlu1 %v2996_v62, %s3276_s13  ;;  %v3568_v23 = vpop.f32.mrb[11].mxu1  ;;  %v3572_v24 = vpack.c.bf16 %v3560_v20, %v3566_v22 }
 0x103   : > { %v3574_v25 = vpop.f32.mrb[12].mxu0 }
 0x104   : > { %v3576_v26 = vpop.f32.mrb[12].mxu1  ;;  %1009 = vrot.lane.b32.xlu0 %v583_v0, %s3275_s9  ;;  %v3580_v27 = vpop.f32.mrb[13].mxu0 }
 0x105   : > { %4922 = vst [vmem:[#allocation3_spill] sm:$0xff] %v3576_v26  ;;  %961 = vrot.lane.b32.xlu1 %v463_v63, %s3275_s9  ;;  %v3582_v28 = vpop.f32.mrb[13].mxu1  ;;  %v3586_v29 = vpack.c.bf16 %v3574_v25, %v3580_v27 }
 0x107   : > { %v3588_v30 = vpop.f32.mrb[14].mxu0 }
 0x108   : > { %v3590_v31 = vpop.f32.mrb[14].mxu1  ;;  %1722 = vrot.lane.b32.xlu0 %v463_v63, %s3276_s13  ;;  %v3594_v32 = vpop.f32.mrb[15].mxu0 }
 0x109   : > { %4923 = vst [vmem:[#allocation4_spill] sm:$0xff] %v3590_v31  ;;  %1770 = vrot.lane.b32.xlu1 %v583_v0, %s3276_s13  ;;  %v3596_v33 = vpop.f32.mrb[15].mxu1  ;;  %v3600_v34 = vpack.c.bf16 %v3588_v30, %v3594_v32 }
 0x10b   : > { %4924 = vst [vmem:[#allocation5_spill] sm:$0xff] %v3600_v34  ;;  %v3602_v35 = vpop.f32.mrb[16].mxu0 }
 0x10c   : > { %v3604_v36 = vpop.f32.mrb[16].mxu1  ;;  %1728 = vrot.lane.b32.xlu0 %v2963_v3, %s3276_s13  ;;  %v3608_v37 = vpop.f32.mrb[17].mxu0 }
 0x10d   : > { %4925 = vst [vmem:[#allocation6_spill] sm:$0xff] %v3604_v36  ;;  %967 = vrot.lane.b32.xlu1 %v2963_v3, %s3275_s9  ;;  %v3610_v38 = vpop.f32.mrb[17].mxu1  ;;  %v3614_v39 = vpack.c.bf16 %v3602_v35, %v3608_v37 }
 0x10f   : > { %v3616_v40 = vpop.f32.mrb[18].mxu0  ;;  %2819 = vmatprep.subr.bf16.mxu1 %v3614_v39 }
 0x110   : > { %v3619_v41 = vpop.f32.mrb[18].mxu1  ;;  %965 = vrot.lane.b32.xlu0 %v3518_v5, %s3275_s9  ;;  %v3624_v42 = vpop.f32.mrb[19].mxu0  ;;  %2820 = vmatpush3.bf16.msra.mxu1 %v3508_v60 }
 0x111   : > { %4926 = vst [vmem:[#allocation7_spill] sm:$0xff] %v3619_v41  ;;  %1015 = vrot.lane.b32.xlu1 %v2999_v4, %s3275_s9  ;;  %v3626_v43 = vpop.f32.mrb[19].mxu1  ;;  %v3630_v44 = vpack.c.bf16 %v3616_v40, %v3624_v42 }
 0x112   : > { %4927 = vst [vmem:[#allocation8_spill] sm:$0xff] %v3626_v43 }
 0x113   : > { %v3633_v45 = vpop.f32.mrb[20].mxu0  ;;  %2821 = vmatprep.subr.bf16.mxu1 %v3630_v44 }
 0x114   : > { %v3636_v46 = vpop.f32.mrb[20].mxu1  ;;  %1013 = vrot.lane.b32.xlu0 %v3520_v6, %s3275_s9  ;;  %v3641_v47 = vpop.f32.mrb[21].mxu0  ;;  %2822 = vmatpush3.bf16.msra.mxu1 %v3512_v1 }
 0x115   : > { %4928 = vst [vmem:[#allocation9_spill] sm:$0xff] %v3636_v46  ;;  %1776 = vrot.lane.b32.xlu1 %v2999_v4, %s3276_s13  ;;  %v3643_v48 = vpop.f32.mrb[21].mxu1  ;;  %v3647_v49 = vpack.c.bf16 %v3633_v45, %v3641_v47 }
 0x116   : > { %4929 = vst [vmem:[#allocation10_spill] sm:$0xff] %v3643_v48 }
 0x117   : > { %v3650_v50 = vpop.f32.mrb[22].mxu0  ;;  %2823 = vmatprep.subr.bf16.mxu1 %v3647_v49 }
 0x118   : > { %v3653_v51 = vpop.f32.mrb[22].mxu1  ;;  %1726 = vrot.lane.b32.xlu0 %v3518_v5, %s3276_s13  ;;  %v3659_v52 = vpop.f32.mrb[23].mxu0  ;;  %2824 = vmatpush3.bf16.msra.mxu1 %v3523_v7 }
 0x119   : > { %4930 = vst [vmem:[#allocation11_spill] sm:$0xff] %v3653_v51  ;;  %1774 = vrot.lane.b32.xlu1 %v3520_v6, %s3276_s13  ;;  %v3661_v53 = vpop.f32.mrb[23].mxu1  ;;  %v3665_v55 = vpack.c.bf16 %v3650_v50, %v3659_v52 }
 0x11a   : > { %4931 = vst [vmem:[#allocation12_spill] sm:$0xff] %v3661_v53 }
 0x11b   : > { %2825 = vmatprep.subr.bf16.mxu1 %v3665_v55 }
 0x11c   : > { %1732 = vrot.lane.b32.xlu0 %v3528_v9, %s3276_s13  ;;  %2826 = vmatpush3.bf16.msra.mxu1 %v3540_v13 }
 0x11d   : > { %971 = vrot.lane.b32.xlu1 %v3528_v9, %s3275_s9  ;;  %2827 = vmatprep.subr.bf16.mxu1 %v3506_v59 }
 0x120   : > { %969 = vrot.lane.b32.xlu0 %v3534_v11, %s3275_s9  ;;  %2828 = vmatpush3.bf16.msra.mxu1 %v3558_v19 }
 0x121   : > { %1019 = vrot.lane.b32.xlu1 %v3530_v10, %s3275_s9  ;;  %2829 = vmatprep.subr.bf16.mxu1 %v3514_v2 }
 0x124   : > { %1017 = vrot.lane.b32.xlu0 %v3536_v12, %s3275_s9  ;;  %2830 = vmatpush3.bf16.msra.mxu1 %v3572_v24 }
 0x125   : > { %1780 = vrot.lane.b32.xlu1 %v3530_v10, %s3276_s13  ;;  %2831 = vmatprep.subr.bf16.mxu1 %v3526_v8 }
 0x128   : > { %1730 = vrot.lane.b32.xlu0 %v3534_v11, %s3276_s13  ;;  %2832 = vmatpush3.bf16.msra.mxu1 %v3586_v29 }
 0x129   : > { %1778 = vrot.lane.b32.xlu1 %v3536_v12, %s3276_s13  ;;  %2833 = vmatprep.subr.bf16.mxu1 %v3544_v14 }
 0x12c   : > { %1736 = vrot.lane.b32.xlu0 %v3546_v15, %s3276_s13  ;;  %2834 = vmatpush3.bf16.msra.mxu1 %v3600_v34 }
 0x12d   : > { %975 = vrot.lane.b32.xlu1 %v3546_v15, %s3275_s9 }
 0x130   : > { %973 = vrot.lane.b32.xlu0 %v3552_v17, %s3275_s9 }
 0x131   : > { %1883 = vperm.xlu1 %3069, %v3548_v16  }
 0x134   : > { %1734 = vrot.lane.b32.xlu0 %v3552_v17, %s3276_s13 }
 0x135   : > { %979 = vrot.lane.b32.xlu1 %v3560_v20, %s3275_s9 }
 0x138   : > { %1879 = vperm.xlu0 %3070, %v3554_v18  }
 0x139   : > { %1887 = vperm.xlu1 %3069, %v3568_v23  }
 0x13c   : > { %1740 = vrot.lane.b32.xlu0 %v3560_v20, %s3276_s13 }
 0x13d   : > { %983 = vrot.lane.b32.xlu1 %v3574_v25, %s3275_s9 }
 0x140   : > { %1891 = vperm.xlu0 %3070, %v3562_v21  }
 0x141   : > { %1895 = vperm.xlu1 %3069, %v3582_v28  }
 0x144   : > { %977 = vrot.lane.b32.xlu0 %v3566_v22, %s3275_s9 }
 0x145   : > { %987 = vrot.lane.b32.xlu1 %v3588_v30, %s3275_s9 }
 0x148   : > { %1738 = vrot.lane.b32.xlu0 %v3566_v22, %s3276_s13 }
 0x149   : > { %1903 = vperm.xlu1 %3069, %v3596_v33  }
 0x14c   : > { %1744 = vrot.lane.b32.xlu0 %v3574_v25, %s3276_s13 }
 0x14d   : > { %991 = vrot.lane.b32.xlu1 %v3602_v35, %s3275_s9 }
 0x150   : > { %1899 = vperm.xlu0 %3070, %v3576_v26  }
 0x151   : > { %1752 = vrot.lane.b32.xlu1 %v3602_v35, %s3276_s13 }
 0x154   : > { %981 = vrot.lane.b32.xlu0 %v3580_v27, %s3275_s9 }
 0x155   : > { %1915 = vperm.xlu1 %3069, %v3604_v36  }
 0x158   : > { %1742 = vrot.lane.b32.xlu0 %v3580_v27, %s3276_s13 }
 0x159   : > { %1750 = vrot.lane.b32.xlu1 %v3608_v37, %s3276_s13 }
 0x15c   : > { %1748 = vrot.lane.b32.xlu0 %v3588_v30, %s3276_s13 }
 0x15d   : > { %995 = vrot.lane.b32.xlu1 %v3616_v40, %s3275_s9 }
 0x15e   : > { %v960_v57 = vpop.permute.xlu0 %959 }
 0x15f   : > { %v3738_v56 = vpop.permute.xlu1 %1007 }
 0x160   : > { %1907 = vperm.xlu0 %3070, %v3590_v31  }
 0x161   : > { %1756 = vrot.lane.b32.xlu1 %v3616_v40, %s3276_s13 }
 0x162   : > { %v1721_v61 = vpop.permute.xlu0 %1720 }
 0x163   : > { %v3743_v58 = vpop.permute.xlu1 %1768 }
 0x164   : > { %985 = vrot.lane.b32.xlu0 %v3594_v32, %s3275_s9 }
 0x165   : > { %1754 = vrot.lane.b32.xlu1 %v3624_v42, %s3276_s13 }
 0x166   : > { %v958_v63 = vpop.permute.xlu0 %957 }
 0x167   : > { %v3749_v62 = vpop.permute.xlu1 %1766 }
 0x168   : > { %1746 = vrot.lane.b32.xlu0 %v3594_v32, %s3276_s13 }
 0x169   : > { %1919 = vperm.xlu1 %3069, %v3626_v43  }
 0x16a   : > { %v3754_v0 = vpop.permute.xlu0 %1005 }
 0x16b   : > { %v964_v3 = vpop.permute.xlu1 %963 }
 0x16c   : > { %989 = vrot.lane.b32.xlu0 %v3608_v37, %s3275_s9 }
 0x16d   : > { %999 = vrot.lane.b32.xlu1 %v3633_v45, %s3275_s9 }
 0x16e   : > { %v1719_v4 = vpop.permute.xlu0 %1718 }
 0x16f   : > { %v3760_v5 = vpop.permute.xlu1 %1011 }
 0x170   : > { %1911 = vperm.xlu0 %3070, %v3610_v38  }
 0x171   : > { %1760 = vrot.lane.b32.xlu1 %v3633_v45, %s3276_s13 }
 0x172   : > { %v1725_v6 = vpop.permute.xlu0 %1724 }
 0x173   : > { %v3765_v9 = vpop.permute.xlu1 %1772 }
 0x174   : > { %1923 = vperm.xlu0 %3070, %v3619_v41  }
 0x175   : > { %1758 = vrot.lane.b32.xlu1 %v3641_v47, %s3276_s13 }
 0x176   : > { %v3770_v10 = vpop.permute.xlu0 %1009 }
 0x177   : > { %v962_v11 = vpop.permute.xlu1 %961 }
 0x178   : > { %993 = vrot.lane.b32.xlu0 %v3624_v42, %s3275_s9 }
 0x179   : > { %1927 = vperm.xlu1 %3069, %v3643_v48  }
 0x17a   : > { %v1723_v12 = vpop.permute.xlu0 %1722 }
 0x17b   : > { %v3775_v15 = vpop.permute.xlu1 %1770 }
 0x17c   : > { %1931 = vperm.xlu0 %3070, %v3636_v46  }
 0x17d   : > { %1003 = vrot.lane.b32.xlu1 %v3650_v50, %s3275_s9 }
 0x17e   : > { %v1729_v17 = vpop.permute.xlu0 %1728 }
 0x17f   : > { %v968_v20 = vpop.permute.xlu1 %967 }
 0x180   : > { %997 = vrot.lane.b32.xlu0 %v3641_v47, %s3275_s9 }
 0x181   : > { %1764 = vrot.lane.b32.xlu1 %v3650_v50, %s3276_s13 }
 0x182   : > { %v966_v25 = vpop.permute.xlu0 %965 }
 0x183   : > { %v3784_v22 = vpop.permute.xlu1 %1015 }
 0x184   : > { %1939 = vperm.xlu0 %3070, %v3653_v51  }
 0x185   : > { %1762 = vrot.lane.b32.xlu1 %v3659_v52, %s3276_s13 }
 0x186   : > { %v3789_v27 = vpop.permute.xlu0 %1013 }
 0x187   : > { %v3791_v30 = vpop.permute.xlu1 %1776 }
 0x188   : > { %1001 = vrot.lane.b32.xlu0 %v3659_v52, %s3275_s9 }
 0x189   : > { %1935 = vperm.xlu1 %3069, %v3661_v53  }
 0x18a   : > { %v1727_v32 = vpop.permute.xlu0 %1726 }
 0x18b   : > { %v3796_v35 = vpop.permute.xlu1 %1774 }
 0x18e   : > { %v1733_v37 = vpop.permute.xlu0 %1732 }
 0x18f   : > { %v972_v40 = vpop.permute.xlu1 %971 }
 0x192   : > { %v970_v42 = vpop.permute.xlu0 %969 }
 0x193   : > { %v3798_v45 = vpop.permute.xlu1 %1019 }
 0x196   : > { %v3800_v47 = vpop.permute.xlu0 %1017 }
 0x197   : > { %v3802_v50 = vpop.permute.xlu1 %1780 }
 0x19a   : > { %v1731_v54 = vpop.permute.xlu0 %1730 }
 0x19b   : > { %v3804_v51 = vpop.permute.xlu1 %1778 }
 0x19e   : > { %v1737_v46 = vpop.permute.xlu0 %1736 }
 0x19f   : > { %v976_v52 = vpop.permute.xlu1 %975 }
 0x1a2   : > { %v974_v53 = vpop.permute.xlu0 %973 }
 0x1a6   : > { %1053 = vxpose.xlu0.b32.start [1/16] (narrow) %v958_v63, 8  ;;  %v1735_v43 = vpop.permute.xlu0 %1734 }
 0x1aa   : > { %1054 = vxpose.xlu0.b32.cont [2/16] (narrow) %v960_v57, 8 }
 0x1ae   : > { %1055 = vxpose.xlu0.b32.cont [3/16] (narrow) %v962_v11, 8 }
 0x1b0   : > { %v3806_v48 = vpop.permute.xlu1 %1883 }
 0x1b2   : > { %1814 = vxpose.xlu1.b32.start [1/16] (narrow) %v1719_v4, 8  ;;  %1056 = vxpose.xlu0.b32.cont [4/16] (narrow) %v964_v3, 8 }
 0x1b4   : > { %v980_v41 = vpop.permute.xlu1 %979 }
 0x1b6   : > { %1815 = vxpose.xlu1.b32.cont [2/16] (narrow) %v1721_v61, 8  ;;  %1057 = vxpose.xlu0.b32.cont [5/16] (narrow) %v966_v25, 8 }
 0x1b7   : > { %v3808_v36 = vpop.permute.xlu0 %1879 }
 0x1b8   : > { %v3810_v31 = vpop.permute.xlu1 %1887 }
 0x1ba   : > { %1816 = vxpose.xlu1.b32.cont [3/16] (narrow) %v1723_v12, 8  ;;  %1058 = vxpose.xlu0.b32.cont [6/16] (narrow) %v968_v20, 8 }
 0x1bb   : > { %v1741_v63 = vpop.permute.xlu0 %1740 }
 0x1bc   : > { %v984_v26 = vpop.permute.xlu1 %983 }
 0x1be   : > { %1817 = vxpose.xlu1.b32.cont [4/16] (narrow) %v1725_v6, 8  ;;  %1059 = vxpose.xlu0.b32.cont [7/16] (narrow) %v970_v42, 8 }
 0x1bf   : > { %v3812_v57 = vpop.permute.xlu0 %1891 }
 0x1c0   : > { %v3814_v11 = vpop.permute.xlu1 %1895 }
 0x1c2   : > { %1818 = vxpose.xlu1.b32.cont [5/16] (narrow) %v1727_v32, 8  ;;  %1060 = vxpose.xlu0.b32.cont [8/16] (narrow) %v972_v40, 8 }
 0x1c3   : > { %v978_v3 = vpop.permute.xlu0 %977 }
 0x1c4   : > { %v988_v4 = vpop.permute.xlu1 %987 }
 0x1c6   : > { %1819 = vxpose.xlu1.b32.cont [6/16] (narrow) %v1729_v17, 8  ;;  %1061 = vxpose.xlu0.b32.cont [9/16] (narrow) %v974_v53, 8 }
 0x1c7   : > { %v1739_v61 = vpop.permute.xlu0 %1738 }
 0x1c8   : > { %v3816_v25 = vpop.permute.xlu1 %1903 }
 0x1ca   : > { %1820 = vxpose.xlu1.b32.cont [7/16] (narrow) %v1731_v54, 8  ;;  %1062 = vxpose.xlu0.b32.cont [10/16] (narrow) %v976_v52, 8 }
 0x1cb   : > { %v1745_v12 = vpop.permute.xlu0 %1744 }
 0x1cc   : > { %v992_v20 = vpop.permute.xlu1 %991 }
 0x1ce   : > { %1821 = vxpose.xlu1.b32.cont [8/16] (narrow) %v1733_v37, 8  ;;  %1063 = vxpose.xlu0.b32.cont [11/16] (narrow) %v978_v3, 8 }
 0x1cf   : > { %v3818_v6 = vpop.permute.xlu0 %1899 }
 0x1d0   : > { %v1753_v42 = vpop.permute.xlu1 %1752 }
 0x1d2   : > { %1822 = vxpose.xlu1.b32.cont [9/16] (narrow) %v1735_v43, 8  ;;  %1064 = vxpose.xlu0.b32.cont [12/16] (narrow) %v980_v41, 8 }
 0x1d3   : > { %v982_v32 = vpop.permute.xlu0 %981 }
 0x1d4   : > { %v3820_v40 = vpop.permute.xlu1 %1915 }
 0x1d6   : > { %1823 = vxpose.xlu1.b32.cont [10/16] (narrow) %v1737_v46, 8  ;;  %1065 = vxpose.xlu0.b32.cont [13/16] (narrow) %v982_v32, 8 }
 0x1d7   : > { %v1743_v53 = vpop.permute.xlu0 %1742 }
 0x1d8   : > { %v1751_v17 = vpop.permute.xlu1 %1750 }
 0x1da   : > { %1824 = vxpose.xlu1.b32.cont [11/16] (narrow) %v1739_v61, 8  ;;  %1066 = vxpose.xlu0.b32.cont [14/16] (narrow) %v984_v26, 8 }
 0x1db   : > { %v1749_v54 = vpop.permute.xlu0 %1748 }
 0x1dc   : > { %v996_v52 = vpop.permute.xlu1 %995 }
 0x1de   : > { %1825 = vxpose.xlu1.b32.cont [12/16] (narrow) %v1741_v63, 8 }
 0x1df   : > { %v3822_v16 = vpop.permute.xlu0 %1907 }
 0x1e0   : > { %v1757_v37 = vpop.permute.xlu1 %1756 }
 0x1e2   : > { %1826 = vxpose.xlu1.b32.cont [13/16] (narrow) %v1743_v53, 8 }
 0x1e3   : > { %v986_v3 = vpop.permute.xlu0 %985 }
 0x1e4   : > { %v1755_v34 = vpop.permute.xlu1 %1754  ;;  %1067 = vxpose.xlu0.b32.cont [15/16] (narrow) %v986_v3, 8 }
 0x1e6   : > { %1827 = vxpose.xlu1.b32.cont [14/16] (narrow) %v1745_v12, 8 }
 0x1e7   : > { %v1747_v41 = vpop.permute.xlu0 %1746 }
 0x1e8   : > { %v3824_v43 = vpop.permute.xlu1 %1919  ;;  %1068 = vxpose.xlu0.b32.end [16/16] (narrow) %v988_v4, 8 }
 0x1ea   : > { %1828 = vxpose.xlu1.b32.cont [15/16] (narrow) %v1747_v41, 8 }
 0x1eb   : > { %v990_v46 = vpop.permute.xlu0 %989 }
 0x1ec   : > { %v1000_v32 = vpop.permute.xlu1 %999  ;;  %1846 = vxpose.xlu0.b32.start [1/16] (narrow) %v1751_v17, 8 }
 0x1ee   : > { %1829 = vxpose.xlu1.b32.end [16/16] (narrow) %v1749_v54, 8 }
 0x1ef   : > { %v3826_v26 = vpop.permute.xlu0 %1911 }
 0x1f0   : > { %v1761_v63 = vpop.permute.xlu1 %1760  ;;  %1847 = vxpose.xlu0.b32.cont [2/16] (narrow) %v1753_v42, 8 }
 0x1f2   : > { %1085 = vxpose.xlu1.b32.start [1/16] (narrow) %v990_v46, 8 }
 0x1f3   : > { %v3828_v61 = vpop.permute.xlu0 %1923 }
 0x1f4   : > { %v1759_v53 = vpop.permute.xlu1 %1758  ;;  %1848 = vxpose.xlu0.b32.cont [3/16] (narrow) %v1755_v34, 8 }
 0x1f6   : > { %1086 = vxpose.xlu1.b32.cont [2/16] (narrow) %v992_v20, 8 }
 0x1f7   : > { %v994_v12 = vpop.permute.xlu0 %993 }
 0x1f8   : > { %v3830_v3 = vpop.permute.xlu1 %1927  ;;  %1849 = vxpose.xlu0.b32.cont [4/16] (narrow) %v1757_v37, 8 }
 0x1fa   : > { %1087 = vxpose.xlu1.b32.cont [3/16] (narrow) %v994_v12, 8 }
 0x1fb   : > { %v3832_v4 = vpop.permute.xlu0 %1931 }
 0x1fc   : > { %v1004_v41 = vpop.permute.xlu1 %1003  ;;  %1850 = vxpose.xlu0.b32.cont [5/16] (narrow) %v1759_v53, 8 }
 0x1fe   : > { %1088 = vxpose.xlu1.b32.cont [4/16] (narrow) %v996_v52, 8 }
 0x1ff   : > { %v998_v17 = vpop.permute.xlu0 %997 }
 0x200   : > { %v1765_v54 = vpop.permute.xlu1 %1764  ;;  %1851 = vxpose.xlu0.b32.cont [6/16] (narrow) %v1761_v63, 8 }
 0x202   : > { %1089 = vxpose.xlu1.b32.cont [5/16] (narrow) %v998_v17, 8 }
 0x203   : > { %v3834_v46 = vpop.permute.xlu0 %1939 }
 0x204   : > { %v1763_v42 = vpop.permute.xlu1 %1762 }
 0x205   : > { %1852 = vxpose.xlu0.b32.cont [7/16] (narrow) %v1763_v42, 8 }
 0x206   : > { %1090 = vxpose.xlu1.b32.cont [6/16] (narrow) %v1000_v32, 8 }
 0x207   : > { %v1002_v34 = vpop.permute.xlu0 %1001 }
 0x209   : > { %1853 = vxpose.xlu0.b32.cont [8/16] (narrow) %v1765_v54, 8 }
 0x20a   : > { %1091 = vxpose.xlu1.b32.cont [7/16] (narrow) %v1002_v34, 8 }
 0x20d   : > { %1854 = vxpose.xlu0.b32.cont [9/16] (narrow) %v3749_v62, 8 }
 0x20e   : > { %1092 = vxpose.xlu1.b32.cont [8/16] (narrow) %v1004_v41, 8  ;;  %v3278_v41 = vmov 64  }
 0x211   : > { %1855 = vxpose.xlu0.b32.cont [10/16] (narrow) %v3743_v58, 8  ;;  %v3862_v58 = vpop.permute.xlu1 %1935 }
 0x212   : > { %1093 = vxpose.xlu1.b32.cont [9/16] (narrow) %v3754_v0, 8 }
 0x215   : > { %1856 = vxpose.xlu0.b32.cont [11/16] (narrow) %v3775_v15, 8 }
 0x216   : > { %1094 = vxpose.xlu1.b32.cont [10/16] (narrow) %v3738_v56, 8 }
 0x219   : > { %1857 = vxpose.xlu0.b32.cont [12/16] (narrow) %v3765_v9, 8 }
 0x21a   : > { %1095 = vxpose.xlu1.b32.cont [11/16] (narrow) %v3770_v10, 8 }
 0x21d   : > { %1858 = vxpose.xlu0.b32.cont [13/16] (narrow) %v3796_v35, 8 }
 0x21e   : > { %1096 = vxpose.xlu1.b32.cont [12/16] (narrow) %v3760_v5, 8 }
 0x221   : > { %1859 = vxpose.xlu0.b32.cont [14/16] (narrow) %v3791_v30, 8 }
 0x222   : > { %1097 = vxpose.xlu1.b32.cont [13/16] (narrow) %v3789_v27, 8 }
 0x225   : > { %1860 = vxpose.xlu0.b32.cont [15/16] (narrow) %v3804_v51, 8  ;;  %v1197_v51 = vlaneseq }
 0x226   : > { %1098 = vxpose.xlu1.b32.cont [14/16] (narrow) %v3784_v22, 8 }
 0x227   : > { %v1198_v56 = vshrl.u32 %v1197_v51, 7 }
 0x229   : > { %1861 = vxpose.xlu0.b32.end [16/16] (narrow) %v3802_v50, 8  ;;  %v3864_v62 = vsub.s32 0, %v1198_v56 }
 0x22a   : > { %1099 = vxpose.xlu1.b32.cont [15/16] (narrow) %v3800_v47, 8 }
 0x22c   : > { %v3880_v0 = vpop.trf.xlu0 }
 0x22e   : > { %1100 = vxpose.xlu1.b32.end [16/16] (narrow) %v3798_v45, 8 }
 0x24c   : > { %2334 = vrot.lane.b32.xlu1 %v3508_v60, %s3277_s10  ;;  %v1830_v60 = vpop.trf.xlu1 }
 0x24d   : > { %3071 = vset.pattern.permute.xlu1 %v3278_v41 }
 0x250   : > { %2336 = vrot.lane.b32.xlu1 %v3512_v1, %s3277_s10  ;;  %v3872_v1 = vld [vmem:[%s3869_s16] sm:$0xff] }
 0x251   : > { %v831_v5 = vunpack.c.1.s8 %v3872_v1  ;;  %v829_v10 = vunpack.c.0.s8 %v3872_v1  ;;  %v833_v47 = vunpack.c.2.s8 %v3872_v1 }
 0x252   : > { %2350 = vrot.lane.b32.xlu0 %v3614_v39, %s3277_s10  ;;  %v3875_v39 = vld [vmem:[%s3869_s16 + $0x8] sm:$0xff] }
 0x253   : > { %v832_v9 = vunpack.c.1.s8 %v3875_v39  ;;  %v830_v22 = vunpack.c.0.s8 %v3875_v39  ;;  %v3890_v30 = vcvt.s32.f32 %v831_v5  ;;  %v3894_v45 = vcvt.s32.f32 %v829_v10  ;;  %3072 = vset.pattern.permute.xlu0 %v3278_v41 }
 0x254   : > { %v834_v50 = vunpack.c.2.s8 %v3875_v39  ;;  %v3908_v12 = vcvt.s32.f32 %v833_v47 }
 0x255   : > { %v3892_v35 = vcvt.s32.f32 %v832_v9  ;;  %v3898_v37 = vcvt.s32.f32 %v830_v22  ;;  %vm4882_vm3 = vcmp.gt.f32.partialorder %v3890_v30, 0.0  ;;  %vm893_vm5 = vcmp.gt.f32.partialorder %v3894_v45, 0.0 }
 0x256   : > { %2352 = vrot.lane.b32.xlu0 %v3630_v44, %s3277_s10  ;;  %v3878_v44 = vrot.slane %v1830_v60, %v3864_v62  ;;  %v3914_v42 = vcvt.s32.f32 %v834_v50  ;;  %vm897_vm12 = vcmp.gt.f32.partialorder %v3908_v12, 0.0 }
 0x257   : > { %4932 = vst [vmem:[#allocation13_spill] sm:$0xff] %v3892_v35  ;;  %vm4879_vm4 = vcmp.gt.f32.partialorder %v3892_v35, 0.0  ;;  %vm894_vm6 = vcmp.gt.f32.partialorder %v3898_v37, 0.0 }
 0x258   : > { %v1952_v15 = vadd.f32 %v3878_v44, %v3806_v48  ;;  %v1950_v27 = vadd.f32 %v3878_v44, %v3808_v36  ;;  %v1954_v63 = vadd.f32 %v3878_v44, %v3810_v31  ;;  %vm898_vm11 = vcmp.gt.f32.partialorder %v3914_v42, 0.0 }
 0x25a   : > { %v2016_v52 = vmul.f32 0.2, %v1952_v15  ;;  %v2014_v32 = vmul.f32 0.2, %v1950_v27  ;;  %vm1984_vm1 = vcmp.gt.f32.partialorder %v1952_v15, 0.0  ;;  %vm1982_vm2 = vcmp.gt.f32.partialorder %v1950_v27, 0.0 }
 0x25b   : > { %v2018_v60 = vmul.f32 0.2, %v1954_v63  ;;  %vm1986_vm9 = vcmp.gt.f32.partialorder %v1954_v63, 0.0 }
 0x25c   : > { %v2048_v51 = vsel %vm1984_vm1, %v1952_v15, %v2016_v52  ;;  %v2046_v56 = vsel %vm1982_vm2, %v1950_v27, %v2014_v32 }
 0x25d   : > { %v3930_v15 = vsel %vm893_vm5, %v2046_v56, -9e+15  ;;  %v2050_v52 = vsel %vm1986_vm9, %v1954_v63, %v2018_v60  ;;  %v836_v63 = vunpack.c.3.s8 %v3875_v39  ;;  %v3969_v56 = vld [vmem:[%s3869_s16 + $0x10] sm:$0xff] }
 0x25e   : > { %v3947_v41 = vsel %vm897_vm12, %v2050_v52, -9e+15 }
 0x26d   : > { %v1862_v20 = vpop.trf.xlu0 }
 0x26e   : > { %v3903_v53 = vrot.slane %v1862_v20, %v3864_v62 }
 0x270   : > { %v1953_v17 = vadd.f32 %v3903_v53, %v3806_v48  ;;  %v1951_v54 = vadd.f32 %v3903_v53, %v3808_v36  ;;  %v1955_v34 = vadd.f32 %v3903_v53, %v3810_v31  ;;  %v3921_v36 = vsel %vm4882_vm3, %v2048_v51, -9e+15 }
 0x271   : > { %v835_v51 = vunpack.c.3.s8 %v3872_v1 }
 0x272   : > { %vm1985_vm7 = vcmp.gt.f32.partialorder %v1953_v17, 0.0  ;;  %v2017_v5 = vmul.f32 0.2, %v1953_v17  ;;  %vm1983_vm8 = vcmp.gt.f32.partialorder %v1951_v54, 0.0  ;;  %v2015_v9 = vmul.f32 0.2, %v1951_v54 }
 0x273   : > { %vm1987_vm10 = vcmp.gt.f32.partialorder %v1955_v34, 0.0  ;;  %v2019_v48 = vmul.f32 0.2, %v1955_v34 }
 0x274   : > { %v2049_v10 = vsel %vm1985_vm7, %v1953_v17, %v2017_v5  ;;  %v2047_v22 = vsel %vm1983_vm8, %v1951_v54, %v2015_v9  ;;  %v1957_v54 = vadd.f32 %v3903_v53, %v3812_v57  ;;  %v1959_v5 = vadd.f32 %v3903_v53, %v3814_v11 }
 0x275   : > { %v3926_v31 = vsel %vm4879_vm4, %v2049_v10, -9e+15  ;;  %v3934_v27 = vsel %vm894_vm6, %v2047_v22, -9e+15  ;;  %v2051_v47 = vsel %vm1987_vm10, %v1955_v34, %v2019_v48  ;;  %v3963_v34 = vld [vmem:[%s3869_s16 + $0x18] sm:$0xff]  ;;  %v3979_v9 = vcvt.s32.f32 %v835_v51 }
 0x276   : > { %v2113_v50 = vmax.f32 %v3921_v36, %v3926_v31  ;;  %v2110_v20 = vmax.f32 %v3930_v15, %v3934_v27  ;;  %v3943_v32 = vsel %vm898_vm11, %v2051_v47, -9e+15  ;;  %v2021_v60 = vmul.f32 0.2, %v1957_v54 }
 0x277   : > { %v2116_v17 = vmax.f32 %v3947_v41, %v3943_v32  ;;  %v838_v39 = vunpack.c.0.s8 %v3963_v34  ;;  %vm1989_vm13 = vcmp.gt.f32.partialorder %v1957_v54, 0.0  ;;  %v1960_v48 = vadd.f32 %v3878_v44, %v3818_v6 }
 0x278   : > { %2114 = vmax.xlane.f32.xlu1 %v2113_v50  ;;  %2111 = vmax.xlane.f32.xlu0 %v2110_v20  ;;  %v837_v10 = vunpack.c.0.s8 %v3969_v56  ;;  %v1958_v22 = vadd.f32 %v3878_v44, %v3814_v11  ;;  %v2053_v50 = vsel %vm1989_vm13, %v1957_v54, %v2021_v60  ;;  %vm4885_vm1 = vcmp.gt.f32.partialorder %v3979_v9, 0.0 }
 0x279   : > { %v3990_v52 = vcvt.s32.f32 %v838_v39  ;;  %vm1991_vm7 = vcmp.gt.f32.partialorder %v1959_v5, 0.0  ;;  %v2024_v51 = vmul.f32 0.2, %v1960_v48  ;;  %vm1992_vm8 = vcmp.gt.f32.partialorder %v1960_v48, 0.0 }
 0x27a   : > { %v3995_v35 = vcvt.s32.f32 %v837_v10  ;;  %v2022_v11 = vmul.f32 0.2, %v1958_v22  ;;  %vm1990_vm9 = vcmp.gt.f32.partialorder %v1958_v22, 0.0 }
 0x27b   : > { %vm902_vm13 = vcmp.gt.f32.partialorder %v3990_v52, 0.0 }
 0x27c   : > { %2117 = vmax.xlane.f32.xlu0 %v2116_v17  ;;  %v2023_v17 = vmul.f32 0.2, %v1959_v5  ;;  %vm901_vm0 = vcmp.gt.f32.partialorder %v3995_v35, 0.0 }
 0x27e   : > { %v2055_v60 = vsel %vm1991_vm7, %v1959_v5, %v2023_v17 }
 0x289   : > { %2338 = vrot.lane.b32.xlu1 %v3523_v7, %s3277_s10  ;;  %v1956_v7 = vadd.f32 %v3878_v44, %v3812_v57  ;;  %v839_v57 = vunpack.c.1.s8 %v3969_v56 }
 0x28b   : > { %v2020_v1 = vmul.f32 0.2, %v1956_v7  ;;  %vm1988_vm15 = vcmp.gt.f32.partialorder %v1956_v7, 0.0 }
 0x28d   : > { %2340 = vrot.lane.b32.xlu1 %v3540_v13, %s3277_s10  ;;  %v3971_v13 = vcvt.s32.f32 %v836_v63  ;;  %v3993_v63 = vcvt.s32.f32 %v839_v57  ;;  %v2056_v57 = vsel %vm1992_vm8, %v1960_v48, %v2024_v51 }
 0x28f   : > { %vm4878_vm14 = vcmp.gt.f32.partialorder %v3971_v13, 0.0 }
 0x292   : > { %2354 = vrot.lane.b32.xlu0 %v3647_v49, %s3277_s10  ;;  %v840_v49 = vunpack.c.1.s8 %v3963_v34 }
 0x294   : > { %v3988_v47 = vcvt.s32.f32 %v840_v49  ;;  %v3999_v49 = vsel %vm4878_vm14, %v2053_v50, -9e+15 }
 0x296   : > { %2356 = vrot.lane.b32.xlu0 %v3665_v55, %s3277_s10  ;;  %v1961_v55 = vadd.f32 %v3903_v53, %v3818_v6  ;;  %4933 = vst [vmem:[#allocation14_spill] sm:$0xff] %v3988_v47  ;;  %v2052_v6 = vsel %vm1988_vm15, %v1956_v7, %v2020_v1  ;;  %vm4876_vm10 = vcmp.gt.f32.partialorder %v3988_v47, 0.0  ;;  %vm4877_vm15 = vcmp.gt.f32.partialorder %v3993_v63, 0.0 }
 0x297   : > { %v4005_v39 = vsel %vm4885_vm1, %v2052_v6, -9e+15  ;;  %v2054_v1 = vsel %vm1990_vm9, %v1958_v22, %v2022_v11  ;;  %v4021_v5 = vsel %vm4877_vm15, %v2056_v57, -9e+15  ;;  %v843_v57 = vunpack.c.3.s8 %v3969_v56 }
 0x298   : > { %v2025_v20 = vmul.f32 0.2, %v1961_v55  ;;  %vm1993_vm2 = vcmp.gt.f32.partialorder %v1961_v55, 0.0  ;;  %v2119_v7 = vmax.f32 %v4005_v39, %v3999_v49  ;;  %v4025_v50 = vsel %vm901_vm0, %v2054_v1, -9e+15 }
 0x29a   : > { %v2057_v54 = vsel %vm1993_vm2, %v1961_v55, %v2025_v20  ;;  %v4017_v55 = vsel %vm902_vm13, %v2055_v60, -9e+15  ;;  %v4031_v20 = vpop.trf.xlu1  ;;  %v1965_v60 = vadd.f32 %v3903_v53, %v3822_v16 }
 0x29b   : > { %v4013_v10 = vsel %vm4876_vm10, %v2057_v54, -9e+15  ;;  %v2122_v22 = vmax.f32 %v4025_v50, %v4017_v55  ;;  %v844_v54 = vunpack.c.3.s8 %v3963_v34 }
 0x29c   : > { %v2125_v48 = vmax.f32 %v4021_v5, %v4013_v10  ;;  %vm1997_vm2 = vcmp.gt.f32.partialorder %v1965_v60, 0.0 }
 0x29d   : > { %v4053_v1 = vcvt.s32.f32 %v844_v54 }
 0x29f   : > { %4934 = vst [vmem:[#allocation15_spill] sm:$0xff] %v4053_v1  ;;  %vm4880_vm10 = vcmp.gt.f32.partialorder %v4053_v1, 0.0 }
 0x2b1   : > { %2120 = vmax.xlane.f32.xlu1 %v2119_v7  ;;  %v1963_v7 = vadd.f32 %v3903_v53, %v3816_v25 }
 0x2b3   : > { %vm1995_vm7 = vcmp.gt.f32.partialorder %v1963_v7, 0.0 }
 0x2b5   : > { %2126 = vmax.xlane.f32.xlu1 %v2125_v48  ;;  %2123 = vmax.xlane.f32.xlu0 %v2122_v22  ;;  %v2029_v48 = vmul.f32 0.2, %v1965_v60 }
 0x2be   : > { %v2335_v17 = vpop.permute.xlu1 %2334 }
 0x2c2   : > { %v2337_v11 = vpop.permute.xlu1 %2336 }
 0x2c4   : > { %v2351_v6 = vpop.permute.xlu0 %2350 }
 0x2c5   : > { %2883 = vmatprep.subr.bf16.mxu0 %v2351_v6 }
 0x2c6   : > { %2342 = vrot.lane.b32.xlu1 %v3558_v19, %s3277_s10  ;;  %2884 = vmatpush3.bf16.msra.mxu0 %v2335_v17  ;;  %v842_v19 = vunpack.c.2.s8 %v3963_v34  ;;  %v2027_v17 = vmul.f32 0.2, %v1963_v7  ;;  %v4057_v34 = vcvt.s32.f32 %v843_v57 }
 0x2c8   : > { %v2353_v51 = vpop.permute.xlu0 %2352  ;;  %v4055_v22 = vcvt.s32.f32 %v842_v19  ;;  %4935 = vst [vmem:[#allocation16_spill] sm:$0xff] %v4057_v34  ;;  %vm4881_vm14 = vcmp.gt.f32.partialorder %v4057_v34, 0.0  ;;  %v1976_v34 = vadd.f32 %v3878_v44, %v3832_v4 }
 0x2c9   : > { %2885 = vmatprep.subr.bf16.mxu0 %v2353_v51 }
 0x2ca   : > { %2344 = vrot.lane.b32.xlu1 %v3572_v24, %s3277_s10  ;;  %2886 = vmatpush3.bf16.msra.mxu0 %v2337_v11  ;;  %v1964_v24 = vadd.f32 %v3878_v44, %v3822_v16  ;;  %v2061_v16 = vsel %vm1997_vm2, %v1965_v60, %v2029_v48  ;;  %vm4907_vm15 = vcmp.gt.f32.partialorder %v4055_v22, 0.0 }
 0x2cb   : > { %2358 = vrot.lane.b32.xlu0 %v3506_v59, %s3277_s10  ;;  %v841_v59 = vunpack.c.2.s8 %v3969_v56  ;;  %v4067_v19 = vsel %vm4880_vm10, %v2061_v16, -9e+15 }
 0x2cc   : > { %v2028_v6 = vmul.f32 0.2, %v1964_v24  ;;  %vm1996_vm8 = vcmp.gt.f32.partialorder %v1964_v24, 0.0 }
 0x2cd   : > { %v4059_v51 = vcvt.s32.f32 %v841_v59 }
 0x2ce   : > { %v2060_v56 = vsel %vm1996_vm8, %v1964_v24, %v2028_v6 }
 0x2cf   : > { %2360 = vrot.lane.b32.xlu0 %v3514_v2, %s3277_s10  ;;  %v1962_v2 = vadd.f32 %v3878_v44, %v3816_v25  ;;  %v2059_v25 = vsel %vm1995_vm7, %v1963_v7, %v2027_v17  ;;  %vm4908_vm4 = vcmp.gt.f32.partialorder %v4059_v51, 0.0  ;;  %v4075_v60 = vsel %vm4881_vm14, %v2060_v56, -9e+15 }
 0x2d0   : > { %v4071_v57 = vsel %vm4907_vm15, %v2059_v25, -9e+15  ;;  %v2131_v24 = vmax.f32 %v4075_v60, %v4067_v19 }
 0x2d1   : > { %v2026_v11 = vmul.f32 0.2, %v1962_v2  ;;  %vm1994_vm9 = vcmp.gt.f32.partialorder %v1962_v2, 0.0 }
 0x2d3   : > { %v2058_v54 = vsel %vm1994_vm9, %v1962_v2, %v2026_v11 }
 0x2d4   : > { %v4079_v7 = vsel %vm4908_vm4, %v2058_v54, -9e+15 }
 0x2d5   : > { %v2128_v59 = vmax.f32 %v4079_v7, %v4071_v57 }
 0x2ee   : > { %2132 = vmax.xlane.f32.xlu1 %v2131_v24  ;;  %2129 = vmax.xlane.f32.xlu0 %v2128_v59 }
 0x2ff   : > { %1119 = vperm.xlu1 %3071, %v3554_v18  }
 0x303   : > { %1129 = vperm.xlu1 %3071, %v3568_v23  }
 0x304   : > { %2362 = vrot.lane.b32.xlu0 %v3526_v8, %s3277_s10 }
 0x305   : > { %v2112_v2 = vpop.xlane.xlu0 %2111  ;;  %v2115_v48 = vpop.xlane.xlu1 %2114 }
 0x306   : > { %v2158_v17 = vsub.f32 %v3930_v15, %v2112_v2  ;;  %v2159_v6 = vsub.f32 %v3934_v27, %v2112_v2  ;;  %v2160_v11 = vsub.f32 %v3921_v36, %v2115_v48  ;;  %v2161_v16 = vsub.f32 %v3926_v31, %v2115_v48  ;;  %v4109_v2 = vld [vmem:[%s3869_s16 + $0x20] sm:$0xff] }
 0x307   : > { %1134 = vperm.xlu1 %3071, %v3562_v21  }
 0x308   : > { %v2190_v25 = vmul.f32 1.442695, %v2158_v17  ;;  %v2192_v56 = vmul.f32 1.442695, %v2159_v6  ;;  %v2194_v18 = vmul.f32 1.442695, %v2160_v11  ;;  %2364 = vrot.lane.b32.xlu0 %v3544_v14, %s3277_s10 }
 0x309   : > { %v2196_v23 = vmul.f32 1.442695, %v2161_v16  ;;  %v2118_v8 = vpop.xlane.xlu0 %2117  ;;  %v2339_v31 = vpop.permute.xlu1 %2338 }
 0x30a   : > { %3074 = vpow2.f32 %v2190_v25  ;;  %v2162_v54 = vsub.f32 %v3947_v41, %v2118_v8  ;;  %v2163_v15 = vsub.f32 %v3943_v32, %v2118_v8  ;;  %v4104_v32 = vld [vmem:[%s3869_s16 + $0x28] sm:$0xff] }
 0x30b   : > { %3076 = vpow2.f32 %v2192_v56  ;;  %1139 = vperm.xlu1 %3071, %v3582_v28   ;;  %v846_v17 = vunpack.c.0.s8 %v4104_v32  ;;  %v845_v56 = vunpack.c.0.s8 %v4109_v2 }
 0x30c   : > { %3078 = vpow2.f32 %v2194_v18  ;;  %v2198_v36 = vmul.f32 1.442695, %v2162_v54  ;;  %v2200_v21 = vmul.f32 1.442695, %v2163_v15  ;;  %v1966_v18 = vadd.f32 %v3878_v44, %v3826_v26 }
 0x30d   : > { %3080 = vpow2.f32 %v2196_v23  ;;  %v2355_v27 = vpop.permute.xlu0 %2354  ;;  %v2341_v41 = vpop.permute.xlu1 %2340  ;;  %v4939_v23 = vld [vmem:[#allocation5_spill] sm:$0xff]  ;;  %v4135_v8 = vcvt.s32.f32 %v846_v17  ;;  %v850_v15 = vunpack.c.2.s8 %v4104_v32 }
 0x30e   : > { %3082 = vpow2.f32 %v2198_v36  ;;  %2887 = vmatprep.subr.bf16.mxu0 %v2355_v27  ;;  %v1971_v36 = vadd.f32 %v3903_v53, %v3824_v43  ;;  %v1970_v27 = vadd.f32 %v3878_v44, %v3824_v43  ;;  %vm1998_vm7 = vcmp.gt.f32.partialorder %v1966_v18, 0.0 }
 0x30f   : > { %3084 = vpow2.f32 %v2200_v21  ;;  %1149 = vperm.xlu1 %3071, %v3596_v33   ;;  %2888 = vmatpush3.bf16.msra.mxu0 %v2339_v31  ;;  %v4140_v21 = vcvt.s32.f32 %v845_v56  ;;  %v849_v31 = vunpack.c.2.s8 %v4109_v2  ;;  %vm4886_vm8 = vcmp.gt.f32.partialorder %v4135_v8, 0.0 }
 0x310   : > { %vm2003_vm9 = vcmp.gt.f32.partialorder %v1971_v36, 0.0  ;;  %vm2002_vm14 = vcmp.gt.f32.partialorder %v1970_v27, 0.0 }
 0x311   : > { %v2357_v14 = vpop.permute.xlu0 %2356  ;;  %vm4904_vm10 = vcmp.gt.f32.partialorder %v4140_v21, 0.0  ;;  %v4149_v17 = vcvt.s32.f32 %v849_v31  ;;  %v1969_v31 = vadd.f32 %v3903_v53, %v3820_v40 }
 0x312   : > { %2889 = vmatprep.subr.bf16.mxu0 %v2357_v14 }
 0x313   : > { %1159 = vperm.xlu1 %3071, %v3610_v38   ;;  %2890 = vmatpush3.bf16.msra.mxu0 %v2341_v41  ;;  %v1967_v38 = vadd.f32 %v3903_v53, %v3826_v26  ;;  %v2030_v26 = vmul.f32 0.2, %v1966_v18  ;;  %v4146_v41 = vcvt.s32.f32 %v850_v15  ;;  %4941 = vst [vmem:[#allocation20_spill] sm:$0xff] %v4149_v17 }
 0x314   : > { %v4101_v28 = vpop.eup %3074 }
 0x315   : > { %v3077_v24 = vpop.eup %3076  ;;  %v2031_v54 = vmul.f32 0.2, %v1967_v38  ;;  %vm1999_vm2 = vcmp.gt.f32.partialorder %v1967_v38, 0.0  ;;  %4940 = vst [vmem:[#allocation5_spill] sm:$0xff] %v4146_v41  ;;  %vm4883_vm3 = vcmp.gt.f32.partialorder %v4146_v41, 0.0  ;;  %v4950_v41 = vld [vmem:[#allocation2_spill] sm:$0xff] }
 0x316   : > { %v4106_v59 = vpop.eup %3078  ;;  %v4112_v48 = vadd.f32 %v3077_v24, %v4101_v28 }
 0x317   : > { %v3081_v33 = vpop.eup %3080  ;;  %2346 = vrot.lane.b32.xlu1 %v3586_v29, %s3277_s10  ;;  %v2063_v14 = vsel %vm1999_vm2, %v1967_v38, %v2031_v54  ;;  %vm4884_vm2 = vcmp.gt.f32.partialorder %v4149_v17, 0.0 }
 0x318   : > { %4936 = vst [vmem:[#allocation17_spill] sm:$0xff] %v4112_v48  ;;  %v4119_v6 = vpop.eup %3082  ;;  %v2303_v11 = vpack.c.bf16 %v3081_v33, %v3077_v24  ;;  %v4122_v16 = vadd.f32 %v3081_v33, %v4106_v59  ;;  %v2035_v24 = vmul.f32 0.2, %v1971_v36  ;;  %v2062_v33 = vsel %vm1998_vm7, %v1966_v18, %v2030_v26 }
 0x319   : > { %v4124_v25 = vpop.eup %3084  ;;  %v4153_v56 = vsel %vm4886_vm8, %v2063_v14, -9e+15  ;;  %v4158_v38 = vsel %vm4904_vm10, %v2062_v33, -9e+15  ;;  %v848_v26 = vunpack.c.1.s8 %v4104_v32  ;;  %v1968_v14 = vadd.f32 %v3878_v44, %v3820_v40 }
 0x31a   : > { %4937 = vst [vmem:[#allocation18_spill] sm:$0xff] %v4122_v16  ;;  %2414 = vmatprep.mubr.bf16.mxu0 %v2303_v11  ;;  %v4131_v29 = vadd.f32 %v4124_v25, %v4119_v6  ;;  %v2034_v11 = vmul.f32 0.2, %v1970_v27  ;;  %v2067_v43 = vsel %vm2003_vm9, %v1971_v36, %v2035_v24  ;;  %v2033_v33 = vmul.f32 0.2, %v1969_v31 }
 0x31b   : > { %2348 = vrot.lane.b32.xlu1 %v4939_v23, %s3277_s10  ;;  %v2134_v23 = vmax.f32 %v4158_v38, %v4153_v56  ;;  %v4165_v54 = vsel %vm4883_vm3, %v2067_v43, -9e+15  ;;  %v4179_v24 = vcvt.s32.f32 %v848_v26  ;;  %v1973_v43 = vadd.f32 %v3903_v53, %v3828_v61 }
 0x31c   : > { %4938 = vst [vmem:[#allocation19_spill] sm:$0xff] %v4131_v29  ;;  %v2066_v18 = vsel %vm2002_vm14, %v1970_v27, %v2034_v11  ;;  %v847_v27 = vunpack.c.1.s8 %v4109_v2  ;;  %v852_v11 = vunpack.c.3.s8 %v4104_v32  ;;  %vm2001_vm14 = vcmp.gt.f32.partialorder %v1969_v31, 0.0 }
 0x31d   : > { %v4169_v15 = vsel %vm4884_vm2, %v2066_v18, -9e+15  ;;  %4942 = vst [vmem:[#allocation21_spill] sm:$0xff] %v4179_v24  ;;  %v2032_v18 = vmul.f32 0.2, %v1968_v14  ;;  %v1972_v29 = vadd.f32 %v3878_v44, %v3828_v61  ;;  %vm2000_vm7 = vcmp.gt.f32.partialorder %v1968_v14, 0.0 }
 0x31e   : > { %v2140_v36 = vmax.f32 %v4169_v15, %v4165_v54  ;;  %vm4902_vm9 = vcmp.gt.f32.partialorder %v4179_v24, 0.0  ;;  %v2065_v40 = vsel %vm2001_vm14, %v1969_v31, %v2033_v33  ;;  %v4190_v26 = vcvt.s32.f32 %v852_v11 }
 0x31f   : > { %v2037_v48 = vmul.f32 0.2, %v1973_v43  ;;  %vm2005_vm3 = vcmp.gt.f32.partialorder %v1973_v43, 0.0  ;;  %v2064_v32 = vsel %vm2000_vm7, %v1968_v14, %v2032_v18  ;;  %vm2004_vm1 = vcmp.gt.f32.partialorder %v1972_v29, 0.0 }
 0x320   : > { %4944 = vst [vmem:[#allocation23_spill] sm:$0xff] %v4190_v26  ;;  %vm4894_vm8 = vcmp.gt.f32.partialorder %v4190_v26, 0.0  ;;  %v1978_v24 = vadd.f32 %v3878_v44, %v3862_v58 }
 0x321   : > { %v2069_v61 = vsel %vm2005_vm3, %v1973_v43, %v2037_v48 }
 0x322   : > { %v4209_v18 = vsel %vm4894_vm8, %v2069_v61, -9e+15 }
 0x323   : > { %4948 = vst [vmem:[#allocation27_spill] sm:$0xff] %v4209_v18 }
 0x327   : > { %2135 = vmax.xlane.f32.xlu0 %v2134_v23  ;;  %v4184_v23 = vcvt.s32.f32 %v847_v27  ;;  %v2036_v27 = vmul.f32 0.2, %v1972_v29 }
 0x329   : > { %4943 = vst [vmem:[#allocation22_spill] sm:$0xff] %v4184_v23  ;;  %vm4903_vm2 = vcmp.gt.f32.partialorder %v4184_v23, 0.0  ;;  %v2068_v14 = vsel %vm2004_vm1, %v1972_v29, %v2036_v27 }
 0x32a   : > { %v4202_v31 = vsel %vm4903_vm2, %v2064_v32, -9e+15 }
 0x32b   : > { %2141 = vmax.xlane.f32.xlu0 %v2140_v36  ;;  %v851_v36 = vunpack.c.3.s8 %v4109_v2  ;;  %v4197_v2 = vsel %vm4902_vm9, %v2065_v40, -9e+15  ;;  %4947 = vst [vmem:[#allocation26_spill] sm:$0xff] %v4202_v31  ;;  %vm2010_vm9 = vcmp.gt.f32.partialorder %v1978_v24, 0.0 }
 0x32c   : > { %4946 = vst [vmem:[#allocation25_spill] sm:$0xff] %v4197_v2  ;;  %v2137_v33 = vmax.f32 %v4202_v31, %v4197_v2  ;;  %v1981_v2 = vadd.f32 %v3903_v53, %v3834_v46 }
 0x32d   : > { %v4193_v16 = vcvt.s32.f32 %v851_v36 }
 0x32e   : > { %vm2013_vm10 = vcmp.gt.f32.partialorder %v1981_v2, 0.0 }
 0x32f   : > { %4945 = vst [vmem:[#allocation24_spill] sm:$0xff] %v4193_v16  ;;  %vm4900_vm14 = vcmp.gt.f32.partialorder %v4193_v16, 0.0 }
 0x330   : > { %v4215_v48 = vsel %vm4900_vm14, %v2068_v14, -9e+15 }
 0x331   : > { %4949 = vst [vmem:[#allocation28_spill] sm:$0xff] %v4215_v48  ;;  %v2143_v29 = vmax.f32 %v4215_v48, %v4209_v18 }
 0x33e   : > { %v2121_v11 = vpop.xlane.xlu1 %2120 }
 0x33f   : > { %v2164_v36 = vsub.f32 %v4005_v39, %v2121_v11  ;;  %v2165_v40 = vsub.f32 %v3999_v49, %v2121_v11  ;;  %2138 = vmax.xlane.f32.xlu1 %v2137_v33 }
 0x341   : > { %v2202_v43 = vmul.f32 1.442695, %v2164_v36  ;;  %v2204_v32 = vmul.f32 1.442695, %v2165_v40  ;;  %1124 = vperm.xlu0 %3072, %v4950_v41   ;;  %v4951_v41 = vld [vmem:[#allocation3_spill] sm:$0xff] }
 0x342   : > { %v2124_v27 = vpop.xlane.xlu0 %2123  ;;  %v2127_v17 = vpop.xlane.xlu1 %2126 }
 0x343   : > { %3086 = vpow2.f32 %v2202_v43  ;;  %v2166_v61 = vsub.f32 %v4025_v50, %v2124_v27  ;;  %v2167_v39 = vsub.f32 %v4017_v55, %v2124_v27  ;;  %v2168_v49 = vsub.f32 %v4021_v5, %v2127_v17  ;;  %2144 = vmax.xlane.f32.xlu1 %v2143_v29  ;;  %v4952_v55 = vld [vmem:[#allocation4_spill] sm:$0xff] }
 0x344   : > { %3088 = vpow2.f32 %v2204_v32  ;;  %v2169_v33 = vsub.f32 %v4013_v10, %v2127_v17  ;;  %v4953_v17 = vld [vmem:[#allocation6_spill] sm:$0xff]  ;;  %v4955_v32 = vld [vmem:[#allocation7_spill] sm:$0xff] }
 0x345   : > { %v2206_v14 = vmul.f32 1.442695, %v2166_v61  ;;  %v2208_v11 = vmul.f32 1.442695, %v2167_v39  ;;  %v2210_v36 = vmul.f32 1.442695, %v2168_v49  ;;  %1144 = vperm.xlu0 %3072, %v4951_v41  }
 0x346   : > { %v2212_v40 = vmul.f32 1.442695, %v2169_v33  ;;  %v2359_v26 = vpop.permute.xlu0 %2358  ;;  %v2343_v16 = vpop.permute.xlu1 %2342  ;;  %v4957_v49 = vld [vmem:[#allocation8_spill] sm:$0xff]  ;;  %v4958_v33 = vld [vmem:[#allocation10_spill] sm:$0xff]  ;;  %v4962_v41 = vld [vmem:[#allocation11_spill] sm:$0xff] }
 0x347   : > { %3090 = vpow2.f32 %v2206_v14  ;;  %2891 = vmatprep.subr.bf16.mxu0 %v2359_v26 }
 0x348   : > { %3092 = vpow2.f32 %v2208_v11  ;;  %2892 = vmatpush3.bf16.msra.mxu0 %v2343_v16  ;;  %v4960_v11 = vld [vmem:[#allocation9_spill] sm:$0xff] }
 0x349   : > { %3094 = vpow2.f32 %v2210_v36  ;;  %1154 = vperm.xlu0 %3072, %v4952_v55   ;;  %v4961_v36 = vld [vmem:[#allocation12_spill] sm:$0xff] }
 0x34a   : > { %3096 = vpow2.f32 %v2212_v40  ;;  %v2361_v5 = vpop.permute.xlu0 %2360  ;;  %v2345_v50 = vpop.permute.xlu1 %2344  ;;  %v4963_v40 = vmov 65   ;;  %v827_v55 = vld [vmem:[%s3869_s16 + $0x30] sm:$0xff] }
 0x34b   : > { %2893 = vmatprep.subr.bf16.mxu0 %v2361_v5  ;;  %v828_v5 = vld [vmem:[%s3869_s16 + $0x38] sm:$0xff]  ;;  %v859_v23 = vunpack.c.3.s8 %v827_v55 }
 0x34c   : > { %2894 = vmatpush3.bf16.msra.mxu0 %v2345_v50  ;;  %v853_v50 = vunpack.c.0.s8 %v827_v55  ;;  %v860_v1 = vunpack.c.3.s8 %v828_v5 }
 0x34d   : > { %v4226_v10 = vpop.eup %3086  ;;  %1164 = vperm.xlu0 %3072, %v4953_v17   ;;  %v854_v17 = vunpack.c.0.s8 %v828_v5 }
 0x34e   : > { %v4229_v43 = vpop.eup %3088  ;;  %v4288_v47 = vcvt.s32.f32 %v860_v1  ;;  %v4301_v1 = vcvt.s32.f32 %v859_v23 }
 0x34f   : > { %v4233_v26 = vadd.f32 %v4229_v43, %v4226_v10 }
 0x350   : > { %vm924_vm4 = vcmp.gt.f32.partialorder %v4288_v47, 0.0 }
 0x351   : > { %4954 = vst [vmem:[#allocation2_spill] sm:$0xff] %v4233_v26  ;;  %v4235_v16 = vpop.eup %3090  ;;  %1174 = vperm.xlu0 %3072, %v4955_v32   ;;  %v4260_v32 = vcvt.s32.f32 %v853_v50  ;;  %v856_v50 = vunpack.c.1.s8 %v828_v5 }
 0x352   : > { %v4238_v29 = vpop.eup %3092 }
 0x353   : > { %v4240_v27 = vpop.eup %3094  ;;  %v4244_v61 = vadd.f32 %v4238_v29, %v4235_v16  ;;  %vm4906_vm3 = vcmp.gt.f32.partialorder %v4260_v32, 0.0 }
 0x354   : > { %v4246_v39 = vpop.eup %3096  ;;  %1169 = vperm.xlu1 %3071, %v4957_v49   ;;  %v1975_v49 = vadd.f32 %v3903_v53, %v3830_v3 }
 0x355   : > { %4956 = vst [vmem:[#allocation3_spill] sm:$0xff] %v4244_v61  ;;  %1179 = vperm.xlu0 %3072, %v4958_v33   ;;  %v4252_v14 = vadd.f32 %v4246_v39, %v4240_v27  ;;  %v1974_v33 = vadd.f32 %v3878_v44, %v3830_v3  ;;  %v4266_v61 = vcvt.s32.f32 %v854_v17  ;;  %v1977_v17 = vadd.f32 %v3903_v53, %v3832_v4 }
 0x356   : > { %vm2007_vm1 = vcmp.gt.f32.partialorder %v1975_v49, 0.0 }
 0x357   : > { %4959 = vst [vmem:[#allocation4_spill] sm:$0xff] %v4252_v14  ;;  %v855_v14 = vunpack.c.1.s8 %v827_v55  ;;  %v2038_v26 = vmul.f32 0.2, %v1974_v33  ;;  %vm4905_vm7 = vcmp.gt.f32.partialorder %v4266_v61, 0.0  ;;  %vm2006_vm8 = vcmp.gt.f32.partialorder %v1974_v33, 0.0 }
 0x358   : > { %1184 = vperm.xlu1 %3071, %v4960_v11   ;;  %v858_v11 = vunpack.c.2.s8 %v828_v5  ;;  %vm2009_vm2 = vcmp.gt.f32.partialorder %v1977_v17, 0.0 }
 0x359   : > { %1189 = vperm.xlu0 %3072, %v4961_v36   ;;  %v2039_v36 = vmul.f32 0.2, %v1975_v49  ;;  %v2070_v5 = vsel %vm2006_vm8, %v1974_v33, %v2038_v26  ;;  %vm2008_vm8 = vcmp.gt.f32.partialorder %v1976_v34, 0.0 }
 0x35a   : > { %v4274_v3 = vcvt.s32.f32 %v858_v11  ;;  %v2042_v11 = vmul.f32 0.2, %v1978_v24  ;;  %v4299_v26 = vsel %vm4906_vm3, %v2070_v5, -9e+15 }
 0x35b   : > { %v2071_v18 = vsel %vm2007_vm1, %v1975_v49, %v2039_v36  ;;  %v1980_v49 = vadd.f32 %v3878_v44, %v3834_v46 }
 0x35c   : > { %1194 = vperm.xlu1 %3071, %v4962_v41   ;;  %v1979_v41 = vadd.f32 %v3903_v53, %v3862_v58  ;;  %v4284_v58 = vcvt.s32.f32 %v855_v14  ;;  %v4294_v4 = vsel %vm4905_vm7, %v2071_v18, -9e+15  ;;  %vm4920_vm1 = vcmp.gt.f32.partialorder %v4274_v3, 0.0 }
 0x35d   : > { %3073 = vset.pattern.permute.xlu0 %v4963_v40  ;;  %v857_v40 = vunpack.c.2.s8 %v827_v55  ;;  %v4286_v55 = vcvt.s32.f32 %v856_v50  ;;  %v2041_v53 = vmul.f32 0.2, %v1977_v17  ;;  %v2040_v14 = vmul.f32 0.2, %v1976_v34 }
 0x35e   : > { %v2043_v48 = vmul.f32 0.2, %v1979_v41  ;;  %vm2011_vm14 = vcmp.gt.f32.partialorder %v1979_v41, 0.0  ;;  %v2146_v46 = vmax.f32 %v4299_v26, %v4294_v4  ;;  %v2074_v44 = vsel %vm2010_vm9, %v1978_v24, %v2042_v11 }
 0x35f   : > { %v4282_v31 = vcvt.s32.f32 %v857_v40  ;;  %v2045_v40 = vmul.f32 0.2, %v1981_v2  ;;  %v2044_v18 = vmul.f32 0.2, %v1980_v49  ;;  %v2073_v33 = vsel %vm2009_vm2, %v1977_v17, %v2041_v53 }
 0x360   : > { %v2075_v36 = vsel %vm2011_vm14, %v1979_v41, %v2043_v48  ;;  %vm920_vm14 = vcmp.gt.f32.partialorder %v4286_v55, 0.0  ;;  %vm2012_vm3 = vcmp.gt.f32.partialorder %v1980_v49, 0.0  ;;  %vm919_vm15 = vcmp.gt.f32.partialorder %v4284_v58, 0.0 }
 0x361   : > { %vm921_vm7 = vcmp.gt.f32.partialorder %v4282_v31, 0.0  ;;  %v4308_v48 = vsel %vm4920_vm1, %v2075_v36, -9e+15  ;;  %v2072_v23 = vsel %vm2008_vm8, %v1976_v34, %v2040_v14  ;;  %v2077_v41 = vsel %vm2013_vm10, %v1981_v2, %v2045_v40  ;;  %v5011_v31 = vld [vmem:[#allocation17_spill] sm:$0xff] }
 0x362   : > { %v4315_v50 = vsel %vm921_vm7, %v2074_v44, -9e+15  ;;  %v4321_v5 = vsel %vm920_vm14, %v2073_v33, -9e+15  ;;  %vm923_vm2 = vcmp.gt.f32.partialorder %v4301_v1, 0.0  ;;  %v2076_v17 = vsel %vm2012_vm3, %v1980_v49, %v2044_v18 }
 0x363   : > { %v2152_v24 = vmax.f32 %v4315_v50, %v4308_v48  ;;  %v4326_v34 = vrot.slane %v4031_v20, %v3864_v62  ;;  %v4330_v53 = vsel %vm919_vm15, %v2072_v23, -9e+15  ;;  %v4334_v36 = vsel %vm924_vm4, %v2077_v41, -9e+15 }
 0x364   : > { %v4342_v20 = vrot.slane %v3880_v0, %v3864_v62  ;;  %v2149_v44 = vmax.f32 %v4330_v53, %v4321_v5  ;;  %v4348_v18 = vsel %vm923_vm2, %v2076_v17, -9e+15 }
 0x378   : > { %2147 = vmax.xlane.f32.xlu0 %v2146_v46 }
 0x37b   : > { %v2130_v11 = vpop.xlane.xlu0 %2129  ;;  %v2133_v2 = vpop.xlane.xlu1 %2132 }
 0x37c   : > { %v2170_v14 = vsub.f32 %v4079_v7, %v2130_v11  ;;  %v2171_v40 = vsub.f32 %v4071_v57, %v2130_v11  ;;  %v2172_v49 = vsub.f32 %v4075_v60, %v2133_v2  ;;  %v2173_v46 = vsub.f32 %v4067_v19, %v2133_v2  ;;  %2153 = vmax.xlane.f32.xlu0 %v2152_v24 }
 0x37d   : > { %v2155_v57 = vmax.f32 %v4348_v18, %v4334_v36 }
 0x37e   : > { %v2214_v33 = vmul.f32 1.442695, %v2170_v14  ;;  %v2216_v7 = vmul.f32 1.442695, %v2171_v40  ;;  %v2218_v23 = vmul.f32 1.442695, %v2172_v49 }
 0x37f   : > { %v2220_v60 = vmul.f32 1.442695, %v2173_v46  ;;  %v2363_v19 = vpop.permute.xlu0 %2362  ;;  %v1120_v41 = vpop.permute.xlu1 %1119 }
 0x380   : > { %3098 = vpow2.f32 %v2214_v33  ;;  %v1205_v62 = vadd.f32 %v4342_v20, %v1120_v41  ;;  %v1206_v0 = vadd.f32 %v4326_v34, %v1120_v41  ;;  %2150 = vmax.xlane.f32.xlu1 %v2149_v44  ;;  %2156 = vmax.xlane.f32.xlu0 %v2155_v57 }
 0x381   : > { %3100 = vpow2.f32 %v2216_v7  ;;  %2895 = vmatprep.subr.bf16.mxu0 %v2363_v19 }
 0x382   : > { %3102 = vpow2.f32 %v2218_v23  ;;  %vm1237_vm10 = vcmp.gt.f32.partialorder %v1205_v62, 0.0  ;;  %vm1238_vm9 = vcmp.gt.f32.partialorder %v1206_v0, 0.0  ;;  %v1269_v24 = vmul.f32 0.2, %v1205_v62 }
 0x383   : > { %3104 = vpow2.f32 %v2220_v60  ;;  %v1270_v17 = vmul.f32 0.2, %v1206_v0  ;;  %v1130_v11 = vpop.permute.xlu1 %1129 }
 0x384   : > { %v1209_v2 = vadd.f32 %v4342_v20, %v1130_v11  ;;  %v1210_v14 = vadd.f32 %v4326_v34, %v1130_v11  ;;  %v1301_v40 = vsel %vm1237_vm10, %v1205_v62, %v1269_v24 }
 0x385   : > { %v1302_v49 = vsel %vm1238_vm9, %v1206_v0, %v1270_v17  ;;  %v4358_v46 = vsel %vm893_vm5, %v1301_v40, -9e+15 }
 0x386   : > { %4964 = vst [vmem:[#allocation6_spill] sm:$0xff] %v4358_v46  ;;  %vm1241_vm3 = vcmp.gt.f32.partialorder %v1209_v2, 0.0  ;;  %vm1242_vm8 = vcmp.gt.f32.partialorder %v1210_v14, 0.0  ;;  %v1273_v44 = vmul.f32 0.2, %v1209_v2 }
 0x387   : > { %v1274_v33 = vmul.f32 0.2, %v1210_v14  ;;  %v4360_v7 = vpop.permute.xlu1 %1134  ;;  %v4364_v23 = vsel %vm894_vm6, %v1302_v49, -9e+15 }
 0x388   : > { %4965 = vst [vmem:[#allocation7_spill] sm:$0xff] %v4364_v23  ;;  %v1365_v57 = vmax.f32 %v4358_v46, %v4364_v23  ;;  %v1305_v60 = vsel %vm1241_vm3, %v1209_v2, %v1273_v44  ;;  %vm4971_vm3 = vcmp.gt.f32.partialorder %v4140_v21, 0.0  ;;  %v2304_v21 = vpack.c.bf16 %v4226_v10, %v4119_v6 }
 0x389   : > { %v1306_v19 = vsel %vm1242_vm8, %v1210_v14, %v1274_v33  ;;  %v4370_v45 = vsel %vm897_vm12, %v1305_v60, -9e+15  ;;  %vm4972_vm8 = vcmp.gt.f32.partialorder %v4135_v8, 0.0  ;;  %v2307_v8 = vpack.c.bf16 %v4246_v39, %v4238_v29 }
 0x38a   : > { %4966 = vst [vmem:[#allocation8_spill] sm:$0xff] %v4370_v45  ;;  %v4372_v41 = vpop.eup %3098  ;;  %1366 = vmax.xlane.f32.xlu1 %v1365_v57  ;;  %v4378_v37 = vsel %vm898_vm11, %v1306_v19, -9e+15  ;;  %v1211_v6 = vadd.f32 %v4342_v20, %v4360_v7 }
 0x38b   : > { %v4374_v62 = vpop.eup %3100  ;;  %v1140_v0 = vpop.permute.xlu1 %1139  ;;  %4967 = vst [vmem:[#allocation10_spill] sm:$0xff] %v4378_v37  ;;  %v1371_v12 = vmax.f32 %v4370_v45, %v4378_v37 }
 0x38c   : > { %v4380_v24 = vpop.eup %3102  ;;  %v1213_v17 = vadd.f32 %v4342_v20, %v1140_v0  ;;  %v1214_v11 = vadd.f32 %v4326_v34, %v1140_v0  ;;  %v4388_v14 = vadd.f32 %v4374_v62, %v4372_v41 }
 0x38d   : > { %v3105_v2 = vpop.eup %3104 }
 0x38e   : > { %vm1245_vm5 = vcmp.gt.f32.partialorder %v1213_v17, 0.0  ;;  %vm1246_vm6 = vcmp.gt.f32.partialorder %v1214_v11, 0.0  ;;  %v1277_v40 = vmul.f32 0.2, %v1213_v17  ;;  %v1278_v42 = vmul.f32 0.2, %v1214_v11  ;;  %1372 = vmax.xlane.f32.xlu1 %v1371_v12 }
 0x38f   : > { %v1150_v49 = vpop.permute.xlu1 %1149  ;;  %v4391_v44 = vadd.f32 %v3105_v2, %v4380_v24 }
 0x390   : > { %v1217_v33 = vadd.f32 %v4342_v20, %v1150_v49  ;;  %v1218_v57 = vadd.f32 %v4326_v34, %v1150_v49  ;;  %v1309_v60 = vsel %vm1245_vm5, %v1213_v17, %v1277_v40  ;;  %v1310_v19 = vsel %vm1246_vm6, %v1214_v11, %v1278_v42 }
 0x391   : > { %v4397_v0 = vsel %vm901_vm0, %v1309_v60, -9e+15  ;;  %v4401_v37 = vsel %vm902_vm13, %v1310_v19, -9e+15  ;;  %vm4969_vm0 = vcmp.gt.f32.partialorder %v4059_v51, 0.0  ;;  %vm4970_vm13 = vcmp.gt.f32.partialorder %v4055_v22, 0.0 }
 0x392   : > { %4968 = vst [vmem:[#allocation9_spill] sm:$0xff] %v4401_v37  ;;  %vm1249_vm11 = vcmp.gt.f32.partialorder %v1217_v33, 0.0  ;;  %vm1250_vm12 = vcmp.gt.f32.partialorder %v1218_v57, 0.0  ;;  %v1281_v12 = vmul.f32 0.2, %v1217_v33  ;;  %v1377_v46 = vmax.f32 %v4397_v0, %v4401_v37 }
 0x393   : > { %v1282_v45 = vmul.f32 0.2, %v1218_v57  ;;  %v1160_v23 = vpop.permute.xlu1 %1159  ;;  %vm1243_vm5 = vcmp.gt.f32.partialorder %v1211_v6, 0.0 }
 0x394   : > { %v1221_v49 = vadd.f32 %v4342_v20, %v1160_v23  ;;  %v1222_v17 = vadd.f32 %v4326_v34, %v1160_v23  ;;  %v1313_v11 = vsel %vm1249_vm11, %v1217_v33, %v1281_v12  ;;  %1378 = vmax.xlane.f32.xlu1 %v1377_v46  ;;  %v2365_v23 = vpop.permute.xlu0 %2364  ;;  %v2302_v12 = vpack.c.bf16 %v4106_v59, %v4101_v28 }
 0x395   : > { %v1314_v35 = vsel %vm1250_vm12, %v1218_v57, %v1282_v45  ;;  %v4409_v52 = vsel %vm4969_vm0, %v1313_v11, -9e+15  ;;  %v2308_v28 = vpack.c.bf16 %v4380_v24, %v4372_v41  ;;  %vm4973_vm0 = vcmp.gt.f32.partialorder %v3979_v9, 0.0 }
 0x396   : > { %v4413_v40 = vsel %vm4970_vm13, %v1314_v35, -9e+15  ;;  %vm1253_vm10 = vcmp.gt.f32.partialorder %v1221_v49, 0.0  ;;  %vm1254_vm9 = vcmp.gt.f32.partialorder %v1222_v17, 0.0  ;;  %v1285_v42 = vmul.f32 0.2, %v1221_v49 }
 0x397   : > { %v1286_v60 = vmul.f32 0.2, %v1222_v17  ;;  %v2347_v19 = vpop.permute.xlu1 %2346  ;;  %v1383_v37 = vmax.f32 %v4409_v52, %v4413_v40  ;;  %vm4974_vm13 = vcmp.gt.f32.partialorder %v3890_v30, 0.0 }
 0x398   : > { %2896 = vmatpush3.bf16.msra.mxu0 %v2347_v19  ;;  %v1317_v45 = vsel %vm1253_vm10, %v1221_v49, %v1285_v42  ;;  %v2306_v49 = vpack.c.bf16 %v4240_v27, %v4235_v16 }
 0x399   : > { %v1318_v46 = vsel %vm1254_vm9, %v1222_v17, %v1286_v60  ;;  %1384 = vmax.xlane.f32.xlu1 %v1383_v37  ;;  %2897 = vmatprep.subr.bf16.mxu0 %v2365_v23  ;;  %v4419_v51 = vsel %vm4971_vm3, %v1317_v45, -9e+15  ;;  %v2305_v37 = vpack.c.bf16 %v4229_v43, %v4124_v25  ;;  %v2309_v17 = vpack.c.bf16 %v3105_v2, %v4374_v62 }
 0x39a   : > { %v4423_v22 = vsel %vm4972_vm8, %v1318_v46, -9e+15  ;;  %v1212_v25 = vadd.f32 %v4326_v34, %v4360_v7  ;;  %v1275_v43 = vmul.f32 0.2, %v1211_v6  ;;  %vm4977_vm8 = vcmp.gt.f32.partialorder %v3971_v13, 0.0 }
 0x39b   : > { %v1389_v33 = vmax.f32 %v4419_v51, %v4423_v22  ;;  %v2349_v57 = vpop.permute.xlu1 %2348 }
 0x39c   : > { %2898 = vmatpush3.bf16.msra.mxu0 %v2349_v57  ;;  %v1276_v29 = vmul.f32 0.2, %v1212_v25  ;;  %vm1244_vm6 = vcmp.gt.f32.partialorder %v1212_v25, 0.0  ;;  %v1307_v62 = vsel %vm1243_vm5, %v1211_v6, %v1275_v43 }
 0x39d   : > { %1390 = vmax.xlane.f32.xlu1 %v1389_v33 }
 0x39e   : > { %v1308_v60 = vsel %vm1244_vm6, %v1212_v25, %v1276_v29 }
 0x39f   : > { %2415 = vmatmul.mubr.bf16.vlgmr.msra.gmra.mrb[24].mxu0 %v2302_v12 }
 0x3a0   : > { %2422 = vmatprep.mubr.bf16.mxu0 %v2305_v37 }
 0x3a7   : > { %2423 = vmatmul.mubr.bf16.gmra.mrb[28].mxu0 %v2304_v21 }
 0x3a8   : > { %2430 = vmatprep.mubr.bf16.mxu0 %v2307_v8 }
 0x3af   : > { %2431 = vmatmul.mubr.bf16.gmra.mrb[32].mxu0 %v2306_v49 }
 0x3b0   : > { %2438 = vmatprep.mubr.bf16.mxu0 %v2309_v17 }
 0x3b4   : > { %v2136_v59 = vpop.xlane.xlu0 %2135 }
 0x3b5   : > { %v2174_v16 = vsub.f32 %v4158_v38, %v2136_v59  ;;  %v2175_v24 = vsub.f32 %v4153_v56, %v2136_v59  ;;  %v4451_v38 = vsel %vm4973_vm0, %v1307_v62, -9e+15 }
 0x3b7   : > { %2439 = vmatmul.mubr.bf16.gmra.mrb[36].mxu0 %v2308_v28  ;;  %v2222_v7 = vmul.f32 1.442695, %v2174_v16  ;;  %v2224_v56 = vmul.f32 1.442695, %v2175_v24  ;;  %v4983_v24 = vld [vmem:[#allocation26_spill] sm:$0xff] }
 0x3b8   : > { %v2142_v10 = vpop.xlane.xlu0 %2141 }
 0x3b9   : > { %v2178_v35 = vsub.f32 %v4169_v15, %v2142_v10  ;;  %v2179_v33 = vsub.f32 %v4165_v54, %v2142_v10  ;;  %v4975_v15 = vld [vmem:[#allocation13_spill] sm:$0xff]  ;;  %3106 = vpow2.f32 %v2222_v7  ;;  %v4468_v54 = vsel %vm4977_vm8, %v1308_v60, -9e+15 }
 0x3ba   : > { %vm4976_vm10 = vcmp.gt.f32.partialorder %v4975_v15, 0.0  ;;  %3108 = vpow2.f32 %v2224_v56  ;;  %v1374_v13 = vmax.f32 %v4451_v38, %v4468_v54 }
 0x3bb   : > { %v2230_v21 = vmul.f32 1.442695, %v2178_v35  ;;  %v2232_v6 = vmul.f32 1.442695, %v2179_v33  ;;  %v4985_v33 = vld [vmem:[#allocation16_spill] sm:$0xff] }
 0x3bd   : > { %3110 = vpow2.f32 %v2230_v21  ;;  %v4988_v21 = vld [vmem:[#allocation28_spill] sm:$0xff] }
 0x3be   : > { %3112 = vpow2.f32 %v2232_v6 }
 0x3c0   : > { %v1125_v27 = vpop.permute.xlu0 %1124 }
 0x3c1   : > { %v1207_v39 = vadd.f32 %v4342_v20, %v1125_v27  ;;  %v1208_v41 = vadd.f32 %v4326_v34, %v1125_v27  ;;  %v4980_v27 = vld [vmem:[#allocation14_spill] sm:$0xff] }
 0x3c3   : > { %vm1239_vm11 = vcmp.gt.f32.partialorder %v1207_v39, 0.0  ;;  %vm1240_vm12 = vcmp.gt.f32.partialorder %v1208_v41, 0.0  ;;  %v1271_v2 = vmul.f32 0.2, %v1207_v39  ;;  %v1272_v11 = vmul.f32 0.2, %v1208_v41 }
 0x3c4   : > { %v1145_v42 = vpop.permute.xlu0 %1144 }
 0x3c5   : > { %v1215_v19 = vadd.f32 %v4342_v20, %v1145_v42  ;;  %v1216_v23 = vadd.f32 %v4326_v34, %v1145_v42  ;;  %v1303_v45 = vsel %vm1239_vm11, %v1207_v39, %v1271_v2  ;;  %v1304_v46 = vsel %vm1240_vm12, %v1208_v41, %v1272_v11  ;;  %v4984_v11 = vld [vmem:[#allocation25_spill] sm:$0xff] }
 0x3c6   : > { %v4458_v57 = vsel %vm4974_vm13, %v1303_v45, -9e+15  ;;  %v4462_v12 = vsel %vm4976_vm10, %v1304_v46, -9e+15  ;;  %vm4978_vm11 = vcmp.gt.f32.partialorder %v3993_v63, 0.0  ;;  %vm4981_vm12 = vcmp.gt.f32.partialorder %v4980_v27, 0.0 }
 0x3c7   : > { %vm1247_vm9 = vcmp.gt.f32.partialorder %v1215_v19, 0.0  ;;  %vm1248_vm3 = vcmp.gt.f32.partialorder %v1216_v23, 0.0  ;;  %v1279_v9 = vmul.f32 0.2, %v1215_v19  ;;  %v1280_v37 = vmul.f32 0.2, %v1216_v23 }
 0x3c8   : > { %v1155_v8 = vpop.permute.xlu0 %1154  ;;  %v1368_v49 = vmax.f32 %v4458_v57, %v4462_v12  ;;  %vm4986_vm10 = vcmp.gt.f32.partialorder %v4985_v33, 0.0 }
 0x3c9   : > { %v1219_v30 = vadd.f32 %v4342_v20, %v1155_v8  ;;  %v1220_v17 = vadd.f32 %v4326_v34, %v1155_v8  ;;  %v1311_v28 = vsel %vm1247_vm9, %v1215_v19, %v1279_v9  ;;  %v1312_v59 = vsel %vm1248_vm3, %v1216_v23, %v1280_v37 }
 0x3ca   : > { %1369 = vmax.xlane.f32.xlu0 %v1368_v49  ;;  %v4476_v16 = vsel %vm4978_vm11, %v1311_v28, -9e+15  ;;  %v4480_v39 = vsel %vm4981_vm12, %v1312_v59, -9e+15  ;;  %v4989_v49 = vld [vmem:[#allocation27_spill] sm:$0xff] }
 0x3cb   : > { %vm1251_vm5 = vcmp.gt.f32.partialorder %v1219_v30, 0.0  ;;  %vm1252_vm6 = vcmp.gt.f32.partialorder %v1220_v17, 0.0  ;;  %v1283_v25 = vmul.f32 0.2, %v1219_v30  ;;  %v1284_v10 = vmul.f32 0.2, %v1220_v17 }
 0x3cc   : > { %v1165_v43 = vpop.permute.xlu0 %1164  ;;  %v2139_v29 = vpop.xlane.xlu1 %2138  ;;  %4979 = vst [vmem:[#allocation12_spill] sm:$0xff] %v4476_v16  ;;  %4982 = vst [vmem:[#allocation11_spill] sm:$0xff] %v4480_v39  ;;  %v1380_v56 = vmax.f32 %v4476_v16, %v4480_v39  ;;  %v4990_v28 = vld [vmem:[#allocation15_spill] sm:$0xff]  ;;  %v5003_v39 = vld [vmem:[#allocation20_spill] sm:$0xff] }
 0x3cd   : > { %v1223_v41 = vadd.f32 %v4342_v20, %v1165_v43  ;;  %v1224_v62 = vadd.f32 %v4326_v34, %v1165_v43  ;;  %v2176_v2 = vsub.f32 %v4983_v24, %v2139_v29  ;;  %v2177_v7 = vsub.f32 %v4984_v11, %v2139_v29 }
 0x3ce   : > { %1375 = vmax.xlane.f32.xlu0 %v1374_v13  ;;  %v1315_v35 = vsel %vm1251_vm5, %v1219_v30, %v1283_v25  ;;  %v1316_v63 = vsel %vm1252_vm6, %v1220_v17, %v1284_v10  ;;  %v4498_v17 = vpop.eup %3106  ;;  %vm4991_vm9 = vcmp.gt.f32.partialorder %v4990_v28, 0.0 }
 0x3cf   : > { %vm1255_vm0 = vcmp.gt.f32.partialorder %v1223_v41, 0.0  ;;  %vm1256_vm13 = vcmp.gt.f32.partialorder %v1224_v62, 0.0  ;;  %v1287_v42 = vmul.f32 0.2, %v1223_v41  ;;  %v1288_v60 = vmul.f32 0.2, %v1224_v62  ;;  %v4506_v43 = vpop.eup %3108 }
 0x3d0   : > { %v2226_v19 = vmul.f32 1.442695, %v2176_v2  ;;  %v2228_v23 = vmul.f32 1.442695, %v2177_v7  ;;  %v1175_v45 = vpop.permute.xlu0 %1174  ;;  %v2145_v46 = vpop.xlane.xlu1 %2144  ;;  %v4492_v15 = vsel %vm4986_vm10, %v1315_v35, -9e+15 }
 0x3d1   : > { %4987 = vst [vmem:[#allocation13_spill] sm:$0xff] %v4492_v15  ;;  %v1227_v9 = vadd.f32 %v4342_v20, %v1175_v45  ;;  %v1228_v37 = vadd.f32 %v4326_v34, %v1175_v45  ;;  %v2180_v8 = vsub.f32 %v4988_v21, %v2145_v46  ;;  %v2181_v30 = vsub.f32 %v4989_v49, %v2145_v46 }
 0x3d2   : > { %3114 = vpow2.f32 %v2226_v19  ;;  %1381 = vmax.xlane.f32.xlu0 %v1380_v56  ;;  %v4502_v59 = vsel %vm4991_vm9, %v1316_v63, -9e+15  ;;  %v1319_v6 = vsel %vm1255_vm0, %v1223_v41, %v1287_v42  ;;  %v1320_v10 = vsel %vm1256_vm13, %v1224_v62, %v1288_v60  ;;  %v4514_v63 = vpop.eup %3110  ;;  %v4993_v42 = vld [vmem:[#allocation22_spill] sm:$0xff]  ;;  %v4996_v19 = vld [vmem:[#allocation21_spill] sm:$0xff] }
 0x3d3   : > { %4992 = vst [vmem:[#allocation14_spill] sm:$0xff] %v4502_v59  ;;  %3116 = vpow2.f32 %v2228_v23  ;;  %vm1259_vm3 = vcmp.gt.f32.partialorder %v1227_v9, 0.0  ;;  %v1291_v25 = vmul.f32 0.2, %v1227_v9  ;;  %vm1260_vm8 = vcmp.gt.f32.partialorder %v1228_v37, 0.0  ;;  %v4525_v56 = vpop.eup %3112 }
 0x3d4   : > { %v2234_v29 = vmul.f32 1.442695, %v2180_v8  ;;  %v2236_v13 = vmul.f32 1.442695, %v2181_v30  ;;  %v1180_v27 = vpop.permute.xlu0 %1179  ;;  %v1170_v24 = vpop.permute.xlu1 %1169  ;;  %v1386_v2 = vmax.f32 %v4492_v15, %v4502_v59  ;;  %v1292_v62 = vmul.f32 0.2, %v1228_v37 }
 0x3d5   : > { %v1229_v11 = vadd.f32 %v4342_v20, %v1180_v27  ;;  %v1230_v7 = vadd.f32 %v4326_v34, %v1180_v27  ;;  %v1225_v41 = vadd.f32 %v4342_v20, %v1170_v24  ;;  %v1226_v35 = vadd.f32 %v4326_v34, %v1170_v24 }
 0x3d6   : > { %3118 = vpow2.f32 %v2234_v29  ;;  %1387 = vmax.xlane.f32.xlu0 %v1386_v2  ;;  %vm4994_vm5 = vcmp.gt.f32.partialorder %v4993_v42, 0.0  ;;  %vm4997_vm6 = vcmp.gt.f32.partialorder %v4996_v19, 0.0  ;;  %v1323_v46 = vsel %vm1259_vm3, %v1227_v9, %v1291_v25 }
 0x3d7   : > { %v4518_v60 = vsel %vm4994_vm5, %v1319_v6, -9e+15  ;;  %v4522_v23 = vsel %vm4997_vm6, %v1320_v10, -9e+15  ;;  %3120 = vpow2.f32 %v2236_v13  ;;  %vm1261_vm11 = vcmp.gt.f32.partialorder %v1229_v11, 0.0  ;;  %v4999_v13 = vld [vmem:[#allocation24_spill] sm:$0xff] }
 0x3d8   : > { %4995 = vst [vmem:[#allocation26_spill] sm:$0xff] %v4518_v60  ;;  %4998 = vst [vmem:[#allocation25_spill] sm:$0xff] %v4522_v23  ;;  %v1293_v45 = vmul.f32 0.2, %v1229_v11  ;;  %vm1262_vm12 = vcmp.gt.f32.partialorder %v1230_v7, 0.0  ;;  %vm1257_vm0 = vcmp.gt.f32.partialorder %v1225_v41, 0.0  ;;  %v1190_v8 = vpop.permute.xlu0 %1189  ;;  %v1185_v49 = vpop.permute.xlu1 %1184  ;;  %v1392_v9 = vmax.f32 %v4518_v60, %v4522_v23 }
 0x3d9   : > { %v1294_v33 = vmul.f32 0.2, %v1230_v7  ;;  %v1289_v21 = vmul.f32 0.2, %v1225_v41  ;;  %v1290_v30 = vmul.f32 0.2, %v1226_v35  ;;  %v1233_v28 = vadd.f32 %v4342_v20, %v1190_v8 }
 0x3da   : > { %v1234_v6 = vadd.f32 %v4326_v34, %v1190_v8  ;;  %v1231_v10 = vadd.f32 %v4342_v20, %v1185_v49  ;;  %v1232_v29 = vadd.f32 %v4326_v34, %v1185_v49  ;;  %v1324_v25 = vsel %vm1260_vm8, %v1228_v37, %v1292_v62  ;;  %1393 = vmax.xlane.f32.xlu0 %v1392_v9  ;;  %v5001_v62 = vld [vmem:[#allocation23_spill] sm:$0xff] }
 0x3db   : > { %vm5000_vm13 = vcmp.gt.f32.partialorder %v4999_v13, 0.0  ;;  %vm1258_vm10 = vcmp.gt.f32.partialorder %v1226_v35, 0.0  ;;  %vm1265_vm9 = vcmp.gt.f32.partialorder %v1233_v28, 0.0  ;;  %v1297_v24 = vmul.f32 0.2, %v1233_v28 }
 0x3dc   : > { %v4536_v27 = vsel %vm5000_vm13, %v1323_v46, -9e+15  ;;  %v1298_v2 = vmul.f32 0.2, %v1234_v6  ;;  %v4538_v42 = vpop.eup %3114  ;;  %vm1266_vm3 = vcmp.gt.f32.partialorder %v1234_v6, 0.0  ;;  %vm1263_vm5 = vcmp.gt.f32.partialorder %v1231_v10, 0.0  ;;  %v1195_v49 = vpop.permute.xlu1 %1194 }
 0x3dd   : > { %v1295_v19 = vmul.f32 0.2, %v1231_v10  ;;  %v1296_v8 = vmul.f32 0.2, %v1232_v29  ;;  %v3117_v59 = vpop.eup %3116  ;;  %v1235_v23 = vadd.f32 %v4342_v20, %v1195_v49  ;;  %v1236_v37 = vadd.f32 %v4326_v34, %v1195_v49 }
 0x3de   : > { %vm5002_vm8 = vcmp.gt.f32.partialorder %v5001_v62, 0.0  ;;  %v1321_v13 = vsel %vm1257_vm0, %v1225_v41, %v1289_v21  ;;  %v1322_v15 = vsel %vm1258_vm10, %v1226_v35, %v1290_v30  ;;  %vm5004_vm6 = vcmp.gt.f32.partialorder %v5003_v39, 0.0 }
 0x3df   : > { %v4544_v46 = vsel %vm5002_vm8, %v1324_v25, -9e+15  ;;  %v4552_v9 = vsel %vm5004_vm6, %v1321_v13, -9e+15  ;;  %v2311_v16 = vpack.c.bf16 %v3117_v59, %v4506_v43  ;;  %vm1264_vm13 = vcmp.gt.f32.partialorder %v1232_v29, 0.0  ;;  %v5005_v25 = vld [vmem:[#allocation5_spill] sm:$0xff] }
 0x3e0   : > { %v1398_v60 = vmax.f32 %v4536_v27, %v4544_v46  ;;  %vm1267_vm1 = vcmp.gt.f32.partialorder %v1235_v23, 0.0  ;;  %v1299_v34 = vmul.f32 0.2, %v1235_v23  ;;  %v1300_v20 = vmul.f32 0.2, %v1236_v37  ;;  %v3119_v49 = vpop.eup %3118  ;;  %v5015_v13 = vld [vmem:[#allocation3_spill] sm:$0xff] }
 0x3e1   : > { %vm5006_vm8 = vcmp.gt.f32.partialorder %v5005_v25, 0.0  ;;  %2446 = vmatprep.mubr.bf16.mxu0 %v2311_v16  ;;  %v2310_v35 = vpack.c.bf16 %v4538_v42, %v4498_v17  ;;  %v1325_v39 = vsel %vm1261_vm11, %v1229_v11, %v1293_v45  ;;  %v1326_v21 = vsel %vm1262_vm12, %v1230_v7, %v1294_v33  ;;  %v3121_v30 = vpop.eup %3120 }
 0x3e2   : > { %1399 = vmax.xlane.f32.xlu0 %v1398_v60  ;;  %v4557_v41 = vsel %vm5006_vm8, %v1322_v15, -9e+15  ;;  %vm1268_vm0 = vcmp.gt.f32.partialorder %v1236_v37, 0.0  ;;  %vm5007_vm10 = vcmp.gt.f32.partialorder %v4260_v32, 0.0  ;;  %v1327_v15 = vsel %vm1263_vm5, %v1231_v10, %v1295_v19 }
 0x3e3   : > { %v1395_v62 = vmax.f32 %v4552_v9, %v4557_v41  ;;  %v4567_v60 = vsel %vm5007_vm10, %v1325_v39, -9e+15  ;;  %2447 = vmatmul.mubr.bf16.gmra.mrb[40].mxu0 %v2310_v35  ;;  %vm5008_vm6 = vcmp.gt.f32.partialorder %v4266_v61, 0.0  ;;  %v1328_v11 = vsel %vm1264_vm13, %v1232_v29, %v1296_v8  ;;  %v5012_v8 = vld [vmem:[#allocation2_spill] sm:$0xff] }
 0x3e4   : > { %v4572_v16 = vsel %vm5008_vm6, %v1326_v21, -9e+15  ;;  %v4577_v7 = vsel %vm919_vm15, %v1327_v15, -9e+15  ;;  %v2313_v45 = vpack.c.bf16 %v3121_v30, %v4525_v56  ;;  %v4582_v32 = vsel %vm920_vm14, %v1328_v11, -9e+15 }
 0x3e5   : > { %1396 = vmax.xlane.f32.xlu1 %v1395_v62  ;;  %v1329_v33 = vsel %vm1265_vm9, %v1233_v28, %v1297_v24  ;;  %v1330_v10 = vsel %vm1266_vm3, %v1234_v6, %v1298_v2  ;;  %v1331_v61 = vsel %vm1267_vm1, %v1235_v23, %v1299_v34  ;;  %v1404_v29 = vmax.f32 %v4577_v7, %v4582_v32  ;;  %v5010_v2 = vld [vmem:[#allocation18_spill] sm:$0xff] }
 0x3e6   : > { %2454 = vmatprep.mubr.bf16.mxu0 %v2313_v45  ;;  %v1332_v58 = vsel %vm1268_vm0, %v1236_v37, %v1300_v20  ;;  %v1401_v19 = vmax.f32 %v4567_v60, %v4572_v16  ;;  %v4594_v55 = vsel %vm923_vm2, %v1331_v61, -9e+15  ;;  %v4602_v23 = vsel %vm921_vm7, %v1329_v33, -9e+15  ;;  %v5014_v37 = vld [vmem:[#allocation4_spill] sm:$0xff] }
 0x3e7   : > { %v4598_v28 = vsel %vm924_vm4, %v1332_v58, -9e+15  ;;  %1405 = vmax.xlane.f32.xlu0 %v1404_v29  ;;  %vm5009_vm15 = vcmp.gt.f32.partialorder %v4274_v3, 0.0  ;;  %v2312_v1 = vpack.c.bf16 %v3119_v49, %v4514_v63  ;;  %v5013_v3 = vld [vmem:[#allocation19_spill] sm:$0xff]  ;;  %v2281_v34 = vadd.f32 %v3117_v59, %v4538_v42  ;;  %v5016_v58 = vld [vmem:[#allocation6_spill] sm:$0xff] }
 0x3e8   : > { %v4606_v6 = vsel %vm5009_vm15, %v1330_v10, -9e+15  ;;  %v1410_v24 = vmax.f32 %v4594_v55, %v4598_v28  ;;  %v2278_v20 = vadd.f32 %v4506_v43, %v4498_v17  ;;  %v2287_v25 = vadd.f32 %v3121_v30, %v3119_v49 }
 0x3e9   : > { %1402 = vmax.xlane.f32.xlu1 %v1401_v19  ;;  %v1407_v47 = vmax.f32 %v4602_v23, %v4606_v6  ;;  %v2284_v35 = vadd.f32 %v4525_v56, %v4514_v63  ;;  %v5017_v19 = vld [vmem:[#allocation7_spill] sm:$0xff]  ;;  %vm5027_vm4 = vcmask 261120   ;;  %vm2614_vm7 = vcmask 523264  }
 0x3ea   : > { %vm5028_vm1 = vmmov %vm5027_vm4 }
 0x3eb   : > { %1411 = vmax.xlane.f32.xlu0 %v1410_v24  ;;  %2455 = vmatmul.mubr.bf16.gmra.mrb[44].mxu0 %v2312_v1  ;;  %vm5029_vm14 = vmmov %vm5028_vm1 }
 0x3ec   : > { %vm5030_vm2 = vmmov %vm5028_vm1 }
 0x3ed   : > { %1408 = vmax.xlane.f32.xlu1 %v1407_v47  ;;  %vm5031_vm11 = vmmov %vm5028_vm1 }
 0x3ee   : > { %vm5032_vm12 = vmmov %vm5028_vm1 }
 0x3ef   : > { %2258 = vadd.xlane.f32.xlu0 %v5010_v2  ;;  %vm5033_vm9 = vmmov %vm5028_vm1 }
 0x3f0   : > { %vm5034_vm3 = vmmov %vm5028_vm1 }
 0x3f1   : > { %2255 = vadd.xlane.f32.xlu1 %v5011_v31  ;;  %v5018_v31 = vld [vmem:[#allocation8_spill] sm:$0xff]  ;;  %vm5035_vm5 = vmmov %vm5028_vm1 }
 0x3f2   : > { %vm5036_vm13 = vmmov %vm5028_vm1 }
 0x3f3   : > { %2264 = vadd.xlane.f32.xlu0 %v5012_v8  ;;  %vm5037_vm8 = vmmov %vm5028_vm1 }
 0x3f4   : > { %vm5038_vm0 = vmmov %vm5028_vm1 }
 0x3f5   : > { %2261 = vadd.xlane.f32.xlu1 %v5013_v3  ;;  %v5019_v3 = vld [vmem:[#allocation10_spill] sm:$0xff]  ;;  %vm5039_vm10 = vmmov %vm5038_vm0 }
 0x3f6   : > { %vm5040_vm6 = vmmov %vm5038_vm0 }
 0x3f7   : > { %2270 = vadd.xlane.f32.xlu0 %v5014_v37  ;;  %vm5041_vm15 = vmmov %vm5038_vm0 }
 0x3f9   : > { %2267 = vadd.xlane.f32.xlu1 %v5015_v13 }
 0x3fb   : > { %2276 = vadd.xlane.f32.xlu0 %v4391_v44 }
 0x3fd   : > { %2273 = vadd.xlane.f32.xlu1 %v4388_v14 }
 0x3ff   : > { %2282 = vadd.xlane.f32.xlu0 %v2281_v34 }
 0x401   : > { %2279 = vadd.xlane.f32.xlu1 %v2278_v20 }
 0x403   : > { %2288 = vadd.xlane.f32.xlu0 %v2287_v25 }
 0x405   : > { %2285 = vadd.xlane.f32.xlu1 %v2284_v35  ;;  %v2148_v39 = vpop.xlane.xlu0 %2147 }
 0x406   : > { %v2182_v21 = vsub.f32 %v4299_v26, %v2148_v39  ;;  %v2183_v44 = vsub.f32 %v4294_v4, %v2148_v39 }
 0x408   : > { %v2238_v62 = vmul.f32 1.442695, %v2182_v21  ;;  %v2240_v14 = vmul.f32 1.442695, %v2183_v44 }
 0x409   : > { %v2154_v15 = vpop.xlane.xlu0 %2153 }
 0x40a   : > { %3122 = vpow2.f32 %v2238_v62  ;;  %v2186_v59 = vsub.f32 %v4315_v50, %v2154_v15  ;;  %v2187_v17 = vsub.f32 %v4308_v48, %v2154_v15 }
 0x40b   : > { %3124 = vpow2.f32 %v2240_v14 }
 0x40c   : > { %v2246_v43 = vmul.f32 1.442695, %v2186_v59  ;;  %v2248_v42 = vmul.f32 1.442695, %v2187_v17  ;;  %v5020_v17 = vld [vmem:[#allocation9_spill] sm:$0xff] }
 0x40d   : > { %v2157_v49 = vpop.xlane.xlu0 %2156  ;;  %v2151_v63 = vpop.xlane.xlu1 %2150 }
 0x40e   : > { %3126 = vpow2.f32 %v2246_v43  ;;  %v2189_v56 = vsub.f32 %v4334_v36, %v2157_v49  ;;  %v2184_v26 = vsub.f32 %v4330_v53, %v2151_v63  ;;  %v2188_v4 = vsub.f32 %v4348_v18, %v2157_v49 }
 0x40f   : > { %3128 = vpow2.f32 %v2248_v42  ;;  %v2185_v30 = vsub.f32 %v4321_v5, %v2151_v63 }
 0x410   : > { %v2252_v11 = vmul.f32 1.442695, %v2189_v56  ;;  %v2242_v45 = vmul.f32 1.442695, %v2184_v26  ;;  %v2250_v33 = vmul.f32 1.442695, %v2188_v4 }
 0x411   : > { %v2244_v50 = vmul.f32 1.442695, %v2185_v30 }
 0x412   : > { %3130 = vpow2.f32 %v2252_v11 }
 0x413   : > { %3132 = vpow2.f32 %v2242_v45 }
 0x414   : > { %v3123_v48 = vpop.eup %3122  ;;  %3134 = vpow2.f32 %v2244_v50 }
 0x415   : > { %v3125_v10 = vpop.eup %3124  ;;  %3136 = vpow2.f32 %v2250_v33 }
 0x416   : > { %v2290_v61 = vadd.f32 %v3125_v10, %v3123_v48 }
 0x417   : > { %v1367_v29 = vpop.xlane.xlu1 %1366 }
 0x418   : > { %v3127_v36 = vpop.eup %3126  ;;  %v1413_v53 = vsub.f32 %v5016_v58, %v1367_v29  ;;  %v1414_v24 = vsub.f32 %v5017_v19, %v1367_v29  ;;  %2291 = vadd.xlane.f32.xlu1 %v2290_v61 }
 0x419   : > { %v3129_v18 = vpop.eup %3128 }
 0x41a   : > { %v1445_v5 = vmul.f32 1.442695, %v1413_v53  ;;  %v1447_v1 = vmul.f32 1.442695, %v1414_v24  ;;  %v2296_v47 = vadd.f32 %v3129_v18, %v3127_v36 }
 0x41b   : > { %v1373_v2 = vpop.xlane.xlu1 %1372 }
 0x41c   : > { %3138 = vpow2.f32 %v1445_v5  ;;  %v1417_v8 = vsub.f32 %v5018_v31, %v1373_v2  ;;  %v1418_v37 = vsub.f32 %v5019_v3, %v1373_v2  ;;  %2297 = vadd.xlane.f32.xlu1 %v2296_v47  ;;  %v3131_v13 = vpop.eup %3130 }
 0x41d   : > { %3140 = vpow2.f32 %v1447_v1  ;;  %v3133_v34 = vpop.eup %3132  ;;  %v2317_v14 = vpack.c.bf16 %v3131_v13, %v3129_v18 }
 0x41e   : > { %v1453_v20 = vmul.f32 1.442695, %v1417_v8  ;;  %v1455_v25 = vmul.f32 1.442695, %v1418_v37  ;;  %v3135_v35 = vpop.eup %3134  ;;  %v2314_v39 = vpack.c.bf16 %v3133_v34, %v3123_v48 }
 0x41f   : > { %v2315_v21 = vpack.c.bf16 %v3135_v35, %v3125_v10  ;;  %v2293_v44 = vadd.f32 %v3135_v35, %v3133_v34  ;;  %v3137_v62 = vpop.eup %3136 }
 0x420   : > { %3142 = vpow2.f32 %v1453_v20  ;;  %v2299_v42 = vadd.f32 %v3137_v62, %v3131_v13  ;;  %v2316_v33 = vpack.c.bf16 %v3137_v62, %v3127_v36  ;;  %v5022_v62 = vld [vmem:[#allocation11_spill] sm:$0xff] }
 0x421   : > { %3144 = vpow2.f32 %v1455_v25  ;;  %2462 = vmatprep.mubr.bf16.mxu0 %v2315_v21  ;;  %2294 = vadd.xlane.f32.xlu0 %v2293_v44  ;;  %v1379_v15 = vpop.xlane.xlu1 %1378  ;;  %v5021_v21 = vld [vmem:[#allocation12_spill] sm:$0xff] }
 0x422   : > { %2463 = vmatmul.mubr.bf16.gmra.mrb[48].mxu0 %v2314_v39  ;;  %v1421_v59 = vsub.f32 %v4397_v0, %v1379_v15  ;;  %v1422_v43 = vsub.f32 %v5020_v17, %v1379_v15 }
 0x423   : > { %2470 = vmatprep.mubr.bf16.mxu0 %v2317_v14 }
 0x424   : > { %v1461_v49 = vmul.f32 1.442695, %v1421_v59  ;;  %v1463_v63 = vmul.f32 1.442695, %v1422_v43  ;;  %v5023_v59 = vld [vmem:[#allocation13_spill] sm:$0xff]  ;;  %v5024_v43 = vld [vmem:[#allocation14_spill] sm:$0xff] }
 0x425   : > { %2300 = vadd.xlane.f32.xlu0 %v2299_v42 }
 0x426   : > { %v4640_v56 = vpop.eup %3138  ;;  %v1385_v26 = vpop.xlane.xlu1 %1384  ;;  %3146 = vpow2.f32 %v1461_v49 }
 0x427   : > { %v4642_v4 = vpop.eup %3140  ;;  %v1425_v30 = vsub.f32 %v4409_v52, %v1385_v26  ;;  %v1426_v11 = vsub.f32 %v4413_v40, %v1385_v26  ;;  %3148 = vpow2.f32 %v1463_v63 }
 0x428   : > { %v1509_v0 = vadd.f32 %v4642_v4, %v4640_v56 }
 0x429   : > { %v1469_v45 = vmul.f32 1.442695, %v1425_v30  ;;  %v1471_v50 = vmul.f32 1.442695, %v1426_v11 }
 0x42a   : > { %v4648_v48 = vpop.eup %3142  ;;  %1510 = vadd.xlane.f32.xlu1 %v1509_v0  ;;  %v1391_v10 = vpop.xlane.xlu1 %1390  ;;  %2471 = vmatmul.mubr.bf16.gmra.mrb[52].mxu0 %v2316_v33 }
 0x42b   : > { %v4650_v61 = vpop.eup %3144  ;;  %3150 = vpow2.f32 %v1469_v45  ;;  %v1429_v29 = vsub.f32 %v4419_v51, %v1391_v10  ;;  %v1430_v52 = vsub.f32 %v4423_v22, %v1391_v10  ;;  %v5026_v10 = vld [vmem:[#allocation25_spill] sm:$0xff] }
 0x42c   : > { %3152 = vpow2.f32 %v1471_v50  ;;  %v1515_v40 = vadd.f32 %v4650_v61, %v4648_v48  ;;  %v5025_v50 = vld [vmem:[#allocation26_spill] sm:$0xff] }
 0x42d   : > { %v1477_v58 = vmul.f32 1.442695, %v1429_v29  ;;  %v1479_v53 = vmul.f32 1.442695, %v1430_v52 }
 0x42e   : > { %1516 = vadd.xlane.f32.xlu1 %v1515_v40 }
 0x42f   : > { %3154 = vpow2.f32 %v1477_v58 }
 0x430   : > { %3156 = vpow2.f32 %v1479_v53  ;;  %v4656_v36 = vpop.eup %3146 }
 0x431   : > { %v4658_v19 = vpop.eup %3148 }
 0x432   : > { %v1521_v24 = vadd.f32 %v4658_v19, %v4656_v36 }
 0x434   : > { %1522 = vadd.xlane.f32.xlu1 %v1521_v24 }
 0x435   : > { %v4662_v18 = vpop.eup %3150 }
 0x436   : > { %v4664_v51 = vpop.eup %3152 }
 0x437   : > { %v1527_v22 = vadd.f32 %v4664_v51, %v4662_v18 }
 0x439   : > { %v4668_v5 = vpop.eup %3154  ;;  %1528 = vadd.xlane.f32.xlu1 %v1527_v22 }
 0x43a   : > { %v4670_v1 = vpop.eup %3156 }
 0x43b   : > { %v1533_v47 = vadd.f32 %v4670_v1, %v4668_v5 }
 0x43d   : > { %1534 = vadd.xlane.f32.xlu1 %v1533_v47 }
 0x457   : > { %v1370_v2 = vpop.xlane.xlu0 %1369 }
 0x458   : > { %v1415_v31 = vsub.f32 %v4458_v57, %v1370_v2  ;;  %v1416_v8 = vsub.f32 %v4462_v12, %v1370_v2 }
 0x45a   : > { %v1449_v3 = vmul.f32 1.442695, %v1415_v31  ;;  %v1451_v37 = vmul.f32 1.442695, %v1416_v8 }
 0x45b   : > { %v1376_v13 = vpop.xlane.xlu0 %1375 }
 0x45c   : > { %3158 = vpow2.f32 %v1449_v3  ;;  %v1419_v34 = vsub.f32 %v4451_v38, %v1376_v13  ;;  %v1420_v20 = vsub.f32 %v4468_v54, %v1376_v13 }
 0x45d   : > { %3160 = vpow2.f32 %v1451_v37 }
 0x45e   : > { %v1457_v25 = vmul.f32 1.442695, %v1419_v34  ;;  %v1459_v35 = vmul.f32 1.442695, %v1420_v20 }
 0x45f   : > { %v1382_v39 = vpop.xlane.xlu0 %1381 }
 0x460   : > { %3162 = vpow2.f32 %v1457_v25  ;;  %v1423_v44 = vsub.f32 %v5021_v21, %v1382_v39  ;;  %v1424_v14 = vsub.f32 %v5022_v62, %v1382_v39 }
 0x461   : > { %3164 = vpow2.f32 %v1459_v35 }
 0x462   : > { %v1465_v57 = vmul.f32 1.442695, %v1423_v44  ;;  %v1467_v12 = vmul.f32 1.442695, %v1424_v14 }
 0x463   : > { %v1388_v15 = vpop.xlane.xlu0 %1387 }
 0x464   : > { %3166 = vpow2.f32 %v1465_v57  ;;  %v1427_v17 = vsub.f32 %v5023_v59, %v1388_v15  ;;  %v1428_v38 = vsub.f32 %v5024_v43, %v1388_v15 }
 0x465   : > { %3168 = vpow2.f32 %v1467_v12 }
 0x466   : > { %v3159_v54 = vpop.eup %3158  ;;  %v1473_v42 = vmul.f32 1.442695, %v1427_v17  ;;  %v1475_v49 = vmul.f32 1.442695, %v1428_v38 }
 0x467   : > { %v3161_v63 = vpop.eup %3160  ;;  %v1573_v26 = vpack.c.bf16 %v3159_v54, %v4640_v56  ;;  %v1394_v0 = vpop.xlane.xlu0 %1393 }
 0x468   : > { %3170 = vpow2.f32 %v1473_v42  ;;  %v1512_v30 = vadd.f32 %v3161_v63, %v3159_v54  ;;  %v1574_v11 = vpack.c.bf16 %v3161_v63, %v4642_v4  ;;  %v1431_v33 = vsub.f32 %v5025_v50, %v1394_v0 }
 0x469   : > { %3172 = vpow2.f32 %v1475_v49  ;;  %v1432_v29 = vsub.f32 %v5026_v10, %v1394_v0 }
 0x46a   : > { %v3163_v45 = vpop.eup %3162  ;;  %1513 = vadd.xlane.f32.xlu0 %v1512_v30  ;;  %1621 = vmatprep.mubr.bf16.mxu1 %v1574_v11  ;;  %v1481_v40 = vmul.f32 1.442695, %v1431_v33 }
 0x46b   : > { %v3165_v52 = vpop.eup %3164  ;;  %1622 = vmatmul.mubr.bf16.vlgmr.msra.gmra.mrb[24].mxu1 %v1573_v26  ;;  %v1483_v58 = vmul.f32 1.442695, %v1432_v29  ;;  %v1575_v34 = vpack.c.bf16 %v3163_v45, %v4648_v48 }
 0x46c   : > { %v1518_v53 = vadd.f32 %v3165_v52, %v3163_v45  ;;  %v1576_v56 = vpack.c.bf16 %v3165_v52, %v4650_v61  ;;  %3174 = vpow2.f32 %v1481_v40 }
 0x46d   : > { %3176 = vpow2.f32 %v1483_v58 }
 0x46e   : > { %v4687_v22 = vpop.eup %3166  ;;  %1519 = vadd.xlane.f32.xlu0 %v1518_v53  ;;  %1629 = vmatprep.mubr.bf16.mxu1 %v1576_v56 }
 0x46f   : > { %v1400_v24 = vpop.xlane.xlu0 %1399  ;;  %v3169_v2 = vpop.eup %3168 }
 0x470   : > { %v1435_v4 = vsub.f32 %v4536_v27, %v1400_v24  ;;  %v1436_v47 = vsub.f32 %v4544_v46, %v1400_v24  ;;  %v1524_v37 = vadd.f32 %v3169_v2, %v4687_v22  ;;  %v1578_v46 = vpack.c.bf16 %v3169_v2, %v4658_v19 }
 0x472   : > { %v1489_v31 = vmul.f32 1.442695, %v1435_v4  ;;  %v1491_v8 = vmul.f32 1.442695, %v1436_v47  ;;  %v1397_v3 = vpop.xlane.xlu1 %1396  ;;  %v4695_v20 = vpop.eup %3170  ;;  %1525 = vadd.xlane.f32.xlu0 %v1524_v37 }
 0x473   : > { %v1433_v13 = vsub.f32 %v4552_v9, %v1397_v3  ;;  %v1434_v61 = vsub.f32 %v4557_v41, %v1397_v3  ;;  %v2899_v27 = vpop.f32.mrb[24].mxu0  ;;  %v3173_v25 = vpop.eup %3172  ;;  %1630 = vmatmul.mubr.bf16.gmra.mrb[28].mxu1 %v1575_v34  ;;  %v1579_v24 = vpack.c.bf16 %v4695_v20, %v4662_v18 }
 0x474   : > { %3178 = vpow2.f32 %v1489_v31  ;;  %v1406_v21 = vpop.xlane.xlu0 %1405  ;;  %v2900_v44 = vpop.f32.mrb[25].mxu0  ;;  %1637 = vmatprep.mubr.bf16.mxu1 %v1578_v46  ;;  %v1530_v57 = vadd.f32 %v3173_v25, %v4695_v20  ;;  %v1580_v11 = vpack.c.bf16 %v3173_v25, %v4664_v51 }
 0x475   : > { %3180 = vpow2.f32 %v1491_v8  ;;  %v1485_v35 = vmul.f32 1.442695, %v1433_v13  ;;  %v1487_v39 = vmul.f32 1.442695, %v1434_v61  ;;  %v1439_v9 = vsub.f32 %v4577_v7, %v1406_v21  ;;  %v2902_v14 = vpop.f32.mrb[26].mxu0 }
 0x476   : > { %v1440_v41 = vsub.f32 %v4582_v32, %v1406_v21  ;;  %v1403_v62 = vpop.xlane.xlu1 %1402  ;;  %v4700_v48 = vadd.f32 %v2900_v44, %v2899_v27  ;;  %v2903_v15 = vpop.f32.mrb[27].mxu0  ;;  %1531 = vadd.xlane.f32.xlu0 %v1530_v57 }
 0x477   : > { %3182 = vpow2.f32 %v1485_v35  ;;  %v1437_v19 = vsub.f32 %v4567_v60, %v1403_v62  ;;  %v1438_v12 = vsub.f32 %v4572_v16, %v1403_v62  ;;  %v1497_v59 = vmul.f32 1.442695, %v1439_v9  ;;  %v4707_v54 = vpop.eup %3174 }
 0x478   : > { %3184 = vpow2.f32 %v1487_v39  ;;  %v1499_v17 = vmul.f32 1.442695, %v1440_v41  ;;  %v4705_v7 = vadd.f32 %v2903_v15, %v2902_v14  ;;  %v1412_v38 = vpop.xlane.xlu0 %1411  ;;  %v1577_v16 = vpack.c.bf16 %v4687_v22, %v4656_v36  ;;  %v3177_v63 = vpop.eup %3176 }
 0x479   : > { %v1493_v32 = vmul.f32 1.442695, %v1437_v19  ;;  %v1495_v43 = vmul.f32 1.442695, %v1438_v12  ;;  %3186 = vpow2.f32 %v1497_v59  ;;  %v1443_v42 = vsub.f32 %v4594_v55, %v1412_v38 }
 0x47a   : > { %v1444_v49 = vsub.f32 %v4598_v28, %v1412_v38  ;;  %v1409_v60 = vpop.xlane.xlu1 %1408  ;;  %3188 = vpow2.f32 %v1499_v17  ;;  %v1536_v50 = vadd.f32 %v3177_v63, %v4707_v54  ;;  %v2905_v55 = vpop.f32.mrb[28].mxu0  ;;  %v1582_v47 = vpack.c.bf16 %v3177_v63, %v4670_v1 }
 0x47b   : > { %v1441_v26 = vsub.f32 %v4602_v23, %v1409_v60  ;;  %v1442_v30 = vsub.f32 %v4606_v6, %v1409_v60  ;;  %3190 = vpow2.f32 %v1493_v32  ;;  %v1505_v0 = vmul.f32 1.442695, %v1443_v42  ;;  %1638 = vmatmul.mubr.bf16.gmra.mrb[32].mxu1 %v1577_v16  ;;  %v2906_v10 = vpop.f32.mrb[29].mxu0 }
 0x47c   : > { %v1507_v45 = vmul.f32 1.442695, %v1444_v49  ;;  %3192 = vpow2.f32 %v1495_v43  ;;  %1537 = vadd.xlane.f32.xlu0 %v1536_v50  ;;  %1645 = vmatprep.mubr.bf16.mxu1 %v1580_v11  ;;  %v4719_v23 = vadd.f32 %v2906_v10, %v2905_v55  ;;  %v2908_v6 = vpop.f32.mrb[30].mxu0  ;;  %v1581_v21 = vpack.c.bf16 %v4707_v54, %v4668_v5  ;;  %v2259_v14 = vpop.xlane.xlu0 %2258 }
 0x47d   : > { %v1501_v28 = vmul.f32 1.442695, %v1441_v26  ;;  %v1503_v33 = vmul.f32 1.442695, %v1442_v30  ;;  %3194 = vpow2.f32 %v1505_v0  ;;  %v2909_v29 = vpop.f32.mrb[31].mxu0 }
 0x47e   : > { %v4717_v36 = vpop.eup %3178  ;;  %3196 = vpow2.f32 %v1507_v45  ;;  %v4722_v40 = vadd.f32 %v2909_v29, %v2908_v6  ;;  %v2256_v3 = vpop.xlane.xlu1 %2255 }
 0x47f   : > { %v3181_v51 = vpop.eup %3180  ;;  %3198 = vpow2.f32 %v1501_v28 }
 0x480   : > { %v1542_v52 = vadd.f32 %v3181_v51, %v4717_v36  ;;  %3200 = vpow2.f32 %v1503_v33  ;;  %v2265_v32 = vpop.xlane.xlu0 %2264 }
 0x481   : > { %v3183_v58 = vpop.eup %3182  ;;  %3202 = vrcp.f32 %v2256_v3 }
 0x482   : > { %v3185_v53 = vpop.eup %3184  ;;  %1543 = vadd.xlane.f32.xlu0 %v1542_v52  ;;  %v2911_v4 = vpop.f32.mrb[32].mxu0  ;;  %3204 = vrcp.f32 %v2259_v14  ;;  %v1583_v5 = vpack.c.bf16 %v4717_v36, %v3183_v58 }
 0x483   : > { %v1539_v56 = vadd.f32 %v3185_v53, %v3183_v58  ;;  %v3187_v22 = vpop.eup %3186  ;;  %1646 = vmatmul.mubr.bf16.gmra.mrb[36].mxu1 %v1579_v24  ;;  %v2912_v31 = vpop.f32.mrb[33].mxu0  ;;  %v1584_v62 = vpack.c.bf16 %v3181_v51, %v3185_v53 }
 0x484   : > { %v3189_v2 = vpop.eup %3188  ;;  %1653 = vmatprep.mubr.bf16.mxu1 %v1582_v47  ;;  %v2913_v13 = vadd.f32 %v2912_v31, %v2911_v4  ;;  %v2914_v61 = vpop.f32.mrb[34].mxu0 }
 0x485   : > { %1540 = vadd.xlane.f32.xlu1 %v1539_v56  ;;  %v3191_v8 = vpop.eup %3190  ;;  %v1548_v37 = vadd.f32 %v3189_v2, %v3187_v22  ;;  %v2915_v27 = vpop.f32.mrb[35].mxu0 }
 0x486   : > { %v3193_v34 = vpop.eup %3192  ;;  %v4727_v18 = vadd.f32 %v2915_v27, %v2914_v61  ;;  %v2262_v44 = vpop.xlane.xlu1 %2261  ;;  %v1585_v49 = vpack.c.bf16 %v3187_v22, %v3191_v8 }
 0x487   : > { %v3195_v46 = vpop.eup %3194  ;;  %1549 = vadd.xlane.f32.xlu0 %v1548_v37  ;;  %v1545_v25 = vadd.f32 %v3193_v34, %v3191_v8  ;;  %3206 = vrcp.f32 %v2262_v44  ;;  %v1586_v43 = vpack.c.bf16 %v3189_v2, %v3193_v34  ;;  %v2271_v54 = vpop.xlane.xlu0 %2270 }
 0x488   : > { %v3197_v20 = vpop.eup %3196 }
 0x489   : > { %v3199_v35 = vpop.eup %3198  ;;  %1546 = vadd.xlane.f32.xlu1 %v1545_v25  ;;  %v1554_v1 = vadd.f32 %v3197_v20, %v3195_v46 }
 0x48a   : > { %v3201_v39 = vpop.eup %3200  ;;  %v2917_v41 = vpop.f32.mrb[36].mxu0  ;;  %v1587_v55 = vpack.c.bf16 %v3195_v46, %v3199_v35 }
 0x48b   : > { %1555 = vadd.xlane.f32.xlu0 %v1554_v1  ;;  %v1551_v9 = vadd.f32 %v3201_v39, %v3199_v35  ;;  %1654 = vmatmul.mubr.bf16.gmra.mrb[40].mxu1 %v1581_v21  ;;  %v2918_v57 = vpop.f32.mrb[37].mxu0  ;;  %v2268_v17 = vpop.xlane.xlu1 %2267  ;;  %v1588_v60 = vpack.c.bf16 %v3197_v20, %v3201_v39 }
 0x48c   : > { %1661 = vmatprep.mubr.bf16.mxu1 %v1584_v62  ;;  %v2919_v19 = vadd.f32 %v2918_v57, %v2917_v41  ;;  %v2920_v12 = vpop.f32.mrb[38].mxu0  ;;  %3208 = vrcp.f32 %v2268_v17  ;;  %v3203_v42 = vpop.eup %3202 }
 0x48d   : > { %1552 = vadd.xlane.f32.xlu1 %v1551_v9  ;;  %v2921_v15 = vpop.f32.mrb[39].mxu0  ;;  %3210 = vrcp.f32 %v2265_v32  ;;  %v3205_v16 = vpop.eup %3204  ;;  %v2495_v63 = vmul.f32 %v3203_v42, %v4700_v48 }
 0x48e   : > { %v2922_v59 = vadd.f32 %v2921_v15, %v2920_v12  ;;  %v2277_v30 = vpop.xlane.xlu0 %2276  ;;  %v2496_v11 = vmul.f32 %v3205_v16, %v4705_v7 }
 0x48f   : > { %v2274_v38 = vpop.xlane.xlu1 %2273 }
 0x490   : > { %3212 = vrcp.f32 %v2274_v38 }
 0x491   : > { %3214 = vrcp.f32 %v2271_v54  ;;  %v3207_v26 = vpop.eup %3206 }
 0x492   : > { %v2497_v45 = vmul.f32 %v3207_v26, %v4719_v23  ;;  %3216 = vrcp.f32 %v2277_v30  ;;  %v2283_v29 = vpop.xlane.xlu0 %2282 }
 0x493   : > { %1662 = vmatmul.mubr.bf16.gmra.mrb[44].mxu1 %v1583_v5  ;;  %v2280_v6 = vpop.xlane.xlu1 %2279 }
 0x494   : > { %1669 = vmatprep.mubr.bf16.mxu1 %v1586_v43  ;;  %3218 = vrcp.f32 %v2280_v6 }
 0x495   : > { %3220 = vrcp.f32 %v2283_v29 }
 0x496   : > { %v3209_v0 = vpop.eup %3208 }
 0x497   : > { %v3211_v50 = vpop.eup %3210  ;;  %v2499_v48 = vmul.f32 %v3209_v0, %v2913_v13  ;;  %v2286_v52 = vpop.xlane.xlu1 %2285 }
 0x498   : > { %v2498_v33 = vmul.f32 %v3211_v50, %v4722_v40  ;;  %v2289_v40 = vpop.xlane.xlu0 %2288  ;;  %3222 = vrcp.f32 %v2286_v52 }
 0x499   : > { %3224 = vrcp.f32 %v2289_v40 }
 0x49a   : > { %v3213_v28 = vpop.eup %3212 }
 0x49b   : > { %1670 = vmatmul.mubr.bf16.gmra.mrb[48].mxu1 %v1585_v49  ;;  %v3215_v10 = vpop.eup %3214  ;;  %v2501_v7 = vmul.f32 %v3213_v28, %v2919_v19 }
 0x49c   : > { %1677 = vmatprep.mubr.bf16.mxu1 %v1588_v60  ;;  %v2500_v36 = vmul.f32 %v3215_v10, %v4727_v18  ;;  %v3217_v23 = vpop.eup %3216 }
 0x49d   : > { %v2502_v51 = vmul.f32 %v3217_v23, %v2922_v59 }
 0x49e   : > { %2527 = vrot.lane.b32.xlu1 %v2495_v63, %s3279_s19  ;;  %v3219_v22 = vpop.eup %3218 }
 0x49f   : > { %v3221_v31 = vpop.eup %3220 }
 0x4a1   : > { %2529 = vrot.lane.b32.xlu0 %v2496_v11, %s3279_s19 }
 0x4a2   : > { %2531 = vrot.lane.b32.xlu1 %v2497_v45, %s3279_s19  ;;  %v3223_v34 = vpop.eup %3222 }
 0x4a3   : > { %1678 = vmatmul.mubr.bf16.gmra.mrb[52].mxu1 %v1587_v55  ;;  %v3225_v18 = vpop.eup %3224 }
 0x4a5   : > { %2535 = vrot.lane.b32.xlu0 %v2499_v48, %s3279_s19  ;;  %v2292_v35 = vpop.xlane.xlu1 %2291 }
 0x4a6   : > { %2533 = vrot.lane.b32.xlu1 %v2498_v33, %s3279_s19  ;;  %3226 = vrcp.f32 %v2292_v35 }
 0x4a9   : > { %2539 = vrot.lane.b32.xlu0 %v2501_v7, %s3279_s19  ;;  %v2298_v39 = vpop.xlane.xlu1 %2297 }
 0x4aa   : > { %2537 = vrot.lane.b32.xlu1 %v2500_v36, %s3279_s19 }
 0x4ae   : > { %2541 = vrot.lane.b32.xlu1 %v2502_v51, %s3279_s19  ;;  %v2295_v1 = vpop.xlane.xlu0 %2294 }
 0x4af   : > { %3228 = vrcp.f32 %v2295_v1 }
 0x4b0   : > { %3230 = vrcp.f32 %v2298_v39  ;;  %v3227_v14 = vpop.eup %3226 }
 0x4b2   : > { %v2301_v21 = vpop.xlane.xlu0 %2300 }
 0x4b3   : > { %3232 = vrcp.f32 %v2301_v21 }
 0x4b6   : > { %v2923_v58 = vpop.f32.mrb[40].mxu0 }
 0x4b7   : > { %v2924_v53 = vpop.f32.mrb[41].mxu0  ;;  %v1511_v63 = vpop.xlane.xlu1 %1510 }
 0x4b8   : > { %v2925_v56 = vadd.f32 %v2924_v53, %v2923_v58  ;;  %v2926_v24 = vpop.f32.mrb[42].mxu0  ;;  %3234 = vrcp.f32 %v1511_v63 }
 0x4b9   : > { %v2927_v4 = vpop.f32.mrb[43].mxu0  ;;  %v3229_v15 = vpop.eup %3228 }
 0x4ba   : > { %v2503_v47 = vmul.f32 %v3219_v22, %v2925_v56  ;;  %v2928_v2 = vadd.f32 %v2927_v4, %v2926_v24  ;;  %v3231_v38 = vpop.eup %3230  ;;  %v4772_v22 = vld [vmem:[%s4860_s4] ss:$0 sm:$0xff] }
 0x4bb   : > { %v1517_v30 = vpop.xlane.xlu1 %1516 }
 0x4bc   : > { %v2504_v8 = vmul.f32 %v3221_v31, %v2928_v2  ;;  %2543 = vrot.lane.b32.xlu0 %v2503_v47, %s3279_s19 }
 0x4bd   : > { %v3233_v60 = vpop.eup %3232 }
 0x4be   : > { %v2929_v3 = vpop.f32.mrb[44].mxu0  ;;  %2545 = vrot.lane.b32.xlu1 %v2504_v8, %s3279_s19 }
 0x4bf   : > { %v2930_v37 = vpop.f32.mrb[45].mxu0 }
 0x4c0   : > { %v2931_v13 = vadd.f32 %v2930_v37, %v2929_v3  ;;  %v2932_v61 = vpop.f32.mrb[46].mxu0 }
 0x4c1   : > { %v2933_v27 = vpop.f32.mrb[47].mxu0  ;;  %v1523_v0 = vpop.xlane.xlu1 %1522 }
 0x4c2   : > { %v2505_v46 = vmul.f32 %v3223_v34, %v2931_v13  ;;  %v2934_v25 = vadd.f32 %v2933_v27, %v2932_v61  ;;  %v3235_v58 = vpop.eup %3234 }
 0x4c4   : > { %v2506_v20 = vmul.f32 %v3225_v18, %v2934_v25  ;;  %2547 = vrot.lane.b32.xlu0 %v2505_v46, %s3279_s19 }
 0x4c6   : > { %2549 = vrot.lane.b32.xlu1 %v2506_v20, %s3279_s19  ;;  %v1529_v50 = vpop.xlane.xlu1 %1528 }
 0x4ca   : > { %v4753_v48 = vpop.xlane.xlu1 %1534 }
 0x4f5   : > { %v2935_v44 = vpop.f32.mrb[48].mxu0 }
 0x4f6   : > { %v2936_v9 = vpop.f32.mrb[49].mxu0 }
 0x4f7   : > { %v2937_v41 = vadd.f32 %v2936_v9, %v2935_v44  ;;  %v2938_v62 = vpop.f32.mrb[50].mxu0  ;;  %v1514_v26 = vpop.xlane.xlu0 %1513 }
 0x4f8   : > { %v2939_v57 = vpop.f32.mrb[51].mxu0  ;;  %3236 = vrcp.f32 %v1514_v26 }
 0x4f9   : > { %v2507_v19 = vmul.f32 %v3227_v14, %v2937_v41  ;;  %v2940_v12 = vadd.f32 %v2939_v57, %v2938_v62  ;;  %3238 = vrcp.f32 %v1517_v30 }
 0x4fb   : > { %v2508_v59 = vmul.f32 %v3229_v15, %v2940_v12  ;;  %2551 = vrot.lane.b32.xlu0 %v2507_v19, %s3279_s19  ;;  %v1520_v11 = vpop.xlane.xlu0 %1519 }
 0x4fc   : > { %3240 = vrcp.f32 %v1520_v11 }
 0x4fd   : > { %v2941_v17 = vpop.f32.mrb[52].mxu0  ;;  %2553 = vrot.lane.b32.xlu1 %v2508_v59, %s3279_s19  ;;  %3242 = vrcp.f32 %v1523_v0 }
 0x4fe   : > { %v2942_v32 = vpop.f32.mrb[53].mxu0 }
 0x4ff   : > { %v2943_v5 = vadd.f32 %v2942_v32, %v2941_v17  ;;  %v2944_v43 = vpop.f32.mrb[54].mxu0  ;;  %v1526_v45 = vpop.xlane.xlu0 %1525 }
 0x500   : > { %v2945_v54 = vpop.f32.mrb[55].mxu0  ;;  %3244 = vrcp.f32 %v1526_v45 }
 0x501   : > { %v2509_v42 = vmul.f32 %v3231_v38, %v2943_v5  ;;  %v2946_v49 = vadd.f32 %v2945_v54, %v2944_v43  ;;  %3246 = vrcp.f32 %v1529_v50 }
 0x502   : > { %v3237_v47 = vpop.eup %3236 }
 0x503   : > { %v2510_v16 = vmul.f32 %v3233_v60, %v2946_v49  ;;  %2555 = vrot.lane.b32.xlu0 %v2509_v42, %s3279_s19  ;;  %v1532_v55 = vpop.xlane.xlu0 %1531  ;;  %v3239_v18 = vpop.eup %3238 }
 0x504   : > { %3248 = vrcp.f32 %v1532_v55 }
 0x505   : > { %2557 = vrot.lane.b32.xlu1 %v2510_v16, %s3279_s19  ;;  %3250 = vrcp.f32 %v4753_v48 }
 0x506   : > { %v3241_v39 = vpop.eup %3240 }
 0x507   : > { %v3243_v59 = vpop.eup %3242 }
 0x509   : > { %v4755_v28 = vpop.xlane.xlu0 %1537 }
 0x50a   : > { %v3245_v43 = vpop.eup %3244  ;;  %3252 = vrcp.f32 %v4755_v28 }
 0x50b   : > { %v3247_v45 = vpop.eup %3246 }
 0x50f   : > { %v4759_v10 = vpop.xlane.xlu0 %1543 }
 0x512   : > { %v4757_v33 = vpop.xlane.xlu1 %1540 }
 0x513   : > { %3254 = vrcp.f32 %v4757_v33 }
 0x514   : > { %v4763_v36 = vpop.xlane.xlu0 %1549  ;;  %3256 = vrcp.f32 %v4759_v10 }
 0x516   : > { %v4761_v7 = vpop.xlane.xlu1 %1546 }
 0x517   : > { %3258 = vrcp.f32 %v4761_v7 }
 0x518   : > { %v4767_v51 = vpop.xlane.xlu0 %1555  ;;  %3260 = vrcp.f32 %v4763_v36 }
 0x51a   : > { %v4765_v23 = vpop.xlane.xlu1 %1552 }
 0x51b   : > { %3262 = vrcp.f32 %v4765_v23 }
 0x51c   : > { %v2530_v8 = vpop.permute.xlu0 %2529  ;;  %3264 = vrcp.f32 %v4767_v51 }
 0x51e   : > { %v2528_v53 = vpop.permute.xlu1 %2527 }
 0x520   : > { %v2536_v38 = vpop.permute.xlu0 %2535 }
 0x522   : > { %v2532_v61 = vpop.permute.xlu1 %2531 }
 0x526   : > { %v2534_v9 = vpop.permute.xlu1 %2533 }
 0x52a   : > { %v2538_v49 = vpop.permute.xlu1 %2537 }
 0x53e   : > { %v2835_v6 = vpop.f32.mrb[24].mxu1 }
 0x53f   : > { %v2836_v29 = vpop.f32.mrb[25].mxu1 }
 0x540   : > { %v2837_v52 = vadd.f32 %v2836_v29, %v2835_v6  ;;  %v2838_v40 = vpop.f32.mrb[26].mxu1  ;;  %v3249_v29 = vpop.eup %3248 }
 0x541   : > { %v2839_v56 = vpop.f32.mrb[27].mxu1 }
 0x542   : > { %v1702_v24 = vmul.f32 %v3235_v58, %v2837_v52  ;;  %v2840_v4 = vadd.f32 %v2839_v56, %v2838_v40  ;;  %v2540_v52 = vpop.permute.xlu0 %2539  ;;  %v2542_v58 = vpop.permute.xlu1 %2541 }
 0x544   : > { %v2575_v2 = vsel %vm5027_vm4, %v1702_v24, %v2528_v53  ;;  %v1703_v31 = vmul.f32 %v3237_v47, %v2840_v4  ;;  %vm5042_vm4 = vmmov %vm5038_vm0 }
 0x545   : > { %v2598_v3 = vadd.f32 %v4772_v22, %v2575_v2 }
 0x546   : > { %v2576_v37 = vsel %vm5028_vm1, %v1703_v31, %v2530_v8  ;;  %v2841_v13 = vpop.f32.mrb[28].mxu1  ;;  %v3251_v31 = vpop.eup %3250 }
 0x547   : > { %2615 = vst.msk [vmem:[%s4779_s23] sm:$0xff] %vm2614_vm7, %v2598_v3  ;;  %v2599_v34 = vadd.f32 %v4772_v22, %v2576_v37  ;;  %v2842_v27 = vpop.f32.mrb[29].mxu1 }
 0x548   : > { %v2843_v46 = vadd.f32 %v2842_v27, %v2841_v13  ;;  %v2844_v25 = vpop.f32.mrb[30].mxu1  ;;  %v3253_v13 = vpop.eup %3252 }
 0x549   : > { %2616 = vst.msk [vmem:[%s4779_s23 + $0x8] sm:$0xff] %vm2614_vm7, %v2599_v34  ;;  %v2845_v20 = vpop.f32.mrb[31].mxu1  ;;  %v2546_v27 = vpop.permute.xlu1 %2545 }
 0x54a   : > { %v1704_v35 = vmul.f32 %v3239_v18, %v2843_v46  ;;  %v2846_v1 = vadd.f32 %v2845_v20, %v2844_v25 }
 0x54c   : > { %v2577_v21 = vsel %vm5029_vm14, %v1704_v35, %v2532_v61  ;;  %v1705_v44 = vmul.f32 %v3241_v39, %v2846_v1  ;;  %v2544_v61 = vpop.permute.xlu0 %2543  ;;  %v3255_v39 = vpop.eup %3254 }
 0x54d   : > { %v2600_v41 = vadd.f32 %v4772_v22, %v2577_v21 }
 0x54e   : > { %v2578_v62 = vsel %vm5030_vm2, %v1705_v44, %v2534_v9  ;;  %v2847_v14 = vpop.f32.mrb[32].mxu1 }
 0x54f   : > { %2617 = vst.msk [vmem:[%s4779_s23 + $0x10] sm:$0xff] %vm2614_vm7, %v2600_v41  ;;  %v2601_v57 = vadd.f32 %v4772_v22, %v2578_v62  ;;  %v2848_v19 = vpop.f32.mrb[33].mxu1  ;;  %v3257_v41 = vpop.eup %3256 }
 0x550   : > { %v2849_v12 = vadd.f32 %v2848_v19, %v2847_v14  ;;  %v2850_v15 = vpop.f32.mrb[34].mxu1  ;;  %v2548_v62 = vpop.permute.xlu0 %2547 }
 0x551   : > { %2618 = vst.msk [vmem:[%s4779_s23 + $0x18] sm:$0xff] %vm2614_vm7, %v2601_v57  ;;  %v2851_v17 = vpop.f32.mrb[35].mxu1  ;;  %v2550_v57 = vpop.permute.xlu1 %2549 }
 0x552   : > { %v1706_v32 = vmul.f32 %v3243_v59, %v2849_v12  ;;  %v2852_v5 = vadd.f32 %v2851_v17, %v2850_v15 }
 0x554   : > { %v2579_v54 = vsel %vm5031_vm11, %v1706_v32, %v2536_v38  ;;  %v1707_v42 = vmul.f32 %v3245_v43, %v2852_v5  ;;  %v3259_v5 = vpop.eup %3258 }
 0x555   : > { %v2602_v60 = vadd.f32 %v4772_v22, %v2579_v54 }
 0x556   : > { %v2580_v16 = vsel %vm5032_vm12, %v1707_v42, %v2538_v49  ;;  %v2853_v63 = vpop.f32.mrb[36].mxu1  ;;  %v3261_v42 = vpop.eup %3260 }
 0x557   : > { %2619 = vst.msk [vmem:[%s4779_s23 + $0x20] sm:$0xff] %vm2614_vm7, %v2602_v60  ;;  %v2603_v26 = vadd.f32 %v4772_v22, %v2580_v16  ;;  %v2854_v30 = vpop.f32.mrb[37].mxu1 }
 0x558   : > { %v2855_v11 = vadd.f32 %v2854_v30, %v2853_v63  ;;  %v2856_v0 = vpop.f32.mrb[38].mxu1 }
 0x559   : > { %2620 = vst.msk [vmem:[%s4779_s23 + $0x28] sm:$0xff] %vm2614_vm7, %v2603_v26  ;;  %v2857_v50 = vpop.f32.mrb[39].mxu1 }
 0x55a   : > { %v1708_v55 = vmul.f32 %v3247_v45, %v2855_v11  ;;  %v2858_v6 = vadd.f32 %v2857_v50, %v2856_v0  ;;  %v3263_v50 = vpop.eup %3262 }
 0x55c   : > { %v2581_v48 = vsel %vm5033_vm9, %v1708_v55, %v2540_v52  ;;  %v1709_v40 = vmul.f32 %v3249_v29, %v2858_v6  ;;  %v3265_v52 = vpop.eup %3264 }
 0x55d   : > { %v2604_v53 = vadd.f32 %v4772_v22, %v2581_v48 }
 0x55e   : > { %v2582_v56 = vsel %vm5034_vm3, %v1709_v40, %v2542_v58  ;;  %v2859_v24 = vpop.f32.mrb[40].mxu1 }
 0x55f   : > { %2621 = vst.msk [vmem:[%s4779_s23 + $0x30] sm:$0xff] %vm2614_vm7, %v2604_v53  ;;  %v2605_v28 = vadd.f32 %v4772_v22, %v2582_v56  ;;  %v2860_v4 = vpop.f32.mrb[41].mxu1 }
 0x560   : > { %v2861_v47 = vadd.f32 %v2860_v4, %v2859_v24  ;;  %v2862_v2 = vpop.f32.mrb[42].mxu1 }
 0x561   : > { %2622 = vst.msk [vmem:[%s4779_s23 + $0x38] sm:$0xff] %vm2614_vm7, %v2605_v28  ;;  %v2863_v8 = vpop.f32.mrb[43].mxu1 }
 0x562   : > { %v1710_v3 = vmul.f32 %v3251_v31, %v2861_v47  ;;  %v2864_v37 = vadd.f32 %v2863_v8, %v2862_v2 }
 0x564   : > { %v2583_v33 = vsel %vm5035_vm5, %v1710_v3, %v2544_v61  ;;  %v1711_v34 = vmul.f32 %v3253_v13, %v2864_v37 }
 0x565   : > { %v2606_v46 = vadd.f32 %v4772_v22, %v2583_v33 }
 0x566   : > { %v2584_v25 = vsel %vm5036_vm13, %v1711_v34, %v2546_v27  ;;  %v2865_v18 = vpop.f32.mrb[44].mxu1 }
 0x567   : > { %2623 = vst.msk [vmem:[%s4779_s23 + $0x40] sm:$0xff] %vm2614_vm7, %v2606_v46  ;;  %v2607_v10 = vadd.f32 %v4772_v22, %v2584_v25  ;;  %v2866_v20 = vpop.f32.mrb[45].mxu1 }
 0x568   : > { %v2867_v35 = vadd.f32 %v2866_v20, %v2865_v18  ;;  %v2868_v1 = vpop.f32.mrb[46].mxu1 }
 0x569   : > { %2624 = vst.msk [vmem:[%s4779_s23 + $0x48] sm:$0xff] %vm2614_vm7, %v2607_v10  ;;  %v2869_v21 = vpop.f32.mrb[47].mxu1 }
 0x56a   : > { %v1712_v44 = vmul.f32 %v3255_v39, %v2867_v35  ;;  %v2870_v9 = vadd.f32 %v2869_v21, %v2868_v1 }
 0x56c   : > { %v2585_v7 = vsel %vm5037_vm8, %v1712_v44, %v2548_v62  ;;  %v1713_v14 = vmul.f32 %v3257_v41, %v2870_v9 }
 0x56d   : > { %v2608_v19 = vadd.f32 %v4772_v22, %v2585_v7  ;;  %v2552_v49 = vpop.permute.xlu0 %2551 }
 0x56e   : > { %v2586_v12 = vsel %vm5038_vm0, %v1713_v14, %v2550_v57  ;;  %v2871_v15 = vpop.f32.mrb[48].mxu1 }
 0x56f   : > { %2625 = vst.msk [vmem:[%s4779_s23 + $0x50] sm:$0xff] %vm2614_vm7, %v2608_v19  ;;  %v2609_v36 = vadd.f32 %v4772_v22, %v2586_v12  ;;  %v2872_v59 = vpop.f32.mrb[49].mxu1  ;;  %v2554_v63 = vpop.permute.xlu1 %2553 }
 0x570   : > { %v2873_v17 = vadd.f32 %v2872_v59, %v2871_v15  ;;  %v2874_v32 = vpop.f32.mrb[50].mxu1 }
 0x571   : > { %2626 = vst.msk [vmem:[%s4779_s23 + $0x58] sm:$0xff] %vm2614_vm7, %v2609_v36  ;;  %v2875_v43 = vpop.f32.mrb[51].mxu1 }
 0x572   : > { %v1714_v38 = vmul.f32 %v3259_v5, %v2873_v17  ;;  %v2876_v54 = vadd.f32 %v2875_v43, %v2874_v32 }
 0x574   : > { %v2587_v23 = vsel %vm5039_vm10, %v1714_v38, %v2552_v49  ;;  %v1715_v60 = vmul.f32 %v3261_v42, %v2876_v54 }
 0x575   : > { %v2610_v16 = vadd.f32 %v4772_v22, %v2587_v23  ;;  %v2556_v48 = vpop.permute.xlu0 %2555 }
 0x576   : > { %v2588_v26 = vsel %vm5040_vm6, %v1715_v60, %v2554_v63  ;;  %v2877_v30 = vpop.f32.mrb[52].mxu1 }
 0x577   : > { %2627 = vst.msk [vmem:[%s4779_s23 + $0x60] sm:$0xff] %vm2614_vm7, %v2610_v16  ;;  %v2611_v51 = vadd.f32 %v4772_v22, %v2588_v26  ;;  %v2878_v11 = vpop.f32.mrb[53].mxu1  ;;  %v2558_v56 = vpop.permute.xlu1 %2557 }
 0x578   : > { %v2879_v0 = vadd.f32 %v2878_v11, %v2877_v30  ;;  %v2880_v45 = vpop.f32.mrb[54].mxu1 }
 0x579   : > { %2628 = vst.msk [vmem:[%s4779_s23 + $0x68] sm:$0xff] %vm2614_vm7, %v2611_v51  ;;  %v2881_v55 = vpop.f32.mrb[55].mxu1 }
 0x57a   : > { %v1716_v6 = vmul.f32 %v3263_v50, %v2879_v0  ;;  %v2882_v29 = vadd.f32 %v2881_v55, %v2880_v45 }
 0x57c   : > { %v2589_v40 = vsel %vm5041_vm15, %v1716_v6, %v2556_v48  ;;  %v1717_v58 = vmul.f32 %v3265_v52, %v2882_v29 }
 0x57d   : > { %v2612_v53 = vadd.f32 %v4772_v22, %v2589_v40 }
 0x57e   : > { %v2590_v24 = vsel %vm5042_vm4, %v1717_v58, %v2558_v56 }
 0x57f   : > { %2629 = vst.msk [vmem:[%s4779_s23 + $0x70] sm:$0xff] %vm2614_vm7, %v2612_v53  ;;  %v2613_v28 = vadd.f32 %v4772_v22, %v2590_v24 }
 0x581   : > { %2630 = vst.msk [vmem:[%s4779_s23 + $0x78] sm:$0xff] %vm2614_vm7, %v2613_v28 }
 0x582 PF: > { %s15_s18 = sadd.s32 1, %s3272_s18  }
 0x583   : > { %p12_p5 = scmp.ge.s32.totalorder %s15_s18, 4  }
 0x585   :  { %14 = sbr.rel (!%p12_p5) target bundleno = 1 (0x1), region = 73 }

</bundles_post_ra>
